<compile_context>
chip_gen: v7x
topology: tpu7x:2x2x1
jax: 0.10.0
libtpu: 0.0.40
codegen_flags: <defaults>
</compile_context>

<pallas_src>
import jax
import jax.numpy as jnp
from jax.experimental import pallas as pl
from jax.experimental.pallas import tpu as pltpu  # noqa: F401  (TPU-specific tuning hooks)

EPS = 1e-5


def fused_add_relu_conv1x1_bn_kernel(x1_ref, x2_ref, w_ref, gb_ref, o_ref):
    # x1, x2: (Cin, M)   w: (Cout, Cin)   gb: (Cout, 2) = [gamma | beta]   o: (Cout, M)

    # elementwise add + ReLU (VPU); upcast to f32 if activations arrive narrower
    y = jnp.maximum(
        x1_ref[...].astype(jnp.float32) + x2_ref[...].astype(jnp.float32), 0.0
    )

    # 1x1 conv == (Cout, Cin) @ (Cin, M) matmul on the MXU, f32 operands,
    # f32 accumulation.  ~10 MFLOP -> nowhere near the bottleneck here.
    z = jnp.dot(
        w_ref[...].astype(jnp.float32), y, preferred_element_type=jnp.float32
    )

    # BatchNorm with batch statistics, two-pass centered variance:
    #   mean = E[z];  var = E[(z - mean)^2]   (per output channel, over M)
    #   o = (z - mean) * gamma * rsqrt(var + eps) + beta
    m = o_ref.shape[1]
    inv_m = 1.0 / m
    mean = jnp.sum(z, axis=1, keepdims=True) * inv_m            # (Cout, 1)
    zc = z - mean
    var = jnp.sum(zc * zc, axis=1, keepdims=True) * inv_m       # (Cout, 1)
    gamma = gb_ref[:, 0:1]                                      # (Cout, 1)
    beta = gb_ref[:, 1:2]                                       # (Cout, 1)
    scale = gamma * jax.lax.rsqrt(var + EPS)                    # (Cout, 1)
    o_ref[...] = (zc * scale + beta).astype(o_ref.dtype)


def fused_forward(x39_nchw, x47_nchw, conv_w, bn_gamma, bn_beta):
    """x39, x47: (N, C, H, W); conv_w: (Cout, Cin, 1, 1); returns (N, Cout, H, W)."""
    N, C, H, W = x39_nchw.shape
    Cout = conv_w.shape[0]
    M = N * H * W

    if N == 1:
        # zero-cost reshape: (1, C, H, W) -> (C, H*W); no transpose, no copy
        x1 = x39_nchw.reshape(C, M)
        x2 = x47_nchw.reshape(C, M)
    else:
        # TODO(synk): for N > 1, grid over N with Squeezed blocks + two-phase BN
        # (accumulate per-channel sum/sumsq across an 'arbitrary' N axis) to kill
        # these full-HBM-round-trip transposes; not needed for this N=1 module.
        x1 = jnp.transpose(x39_nchw, (1, 0, 2, 3)).reshape(C, M)
        x2 = jnp.transpose(x47_nchw, (1, 0, 2, 3)).reshape(C, M)

    w = conv_w.reshape(Cout, C)                 # direct matmul LHS, no transpose
    # gamma/beta fused into one (Cout, 2) array: one small DMA instead of two
    gb = jnp.concatenate(
        [bn_gamma.reshape(Cout, 1), bn_beta.reshape(Cout, 1)], axis=1
    ).astype(jnp.float32)

    act_bytes = x39_nchw.dtype.itemsize
    out_dtype = x39_nchw.dtype
    cost = pl.CostEstimate(
        flops=2 * Cout * C * M + 2 * C * M + 6 * Cout * M,
        transcendentals=Cout,                   # rsqrt per output channel
        bytes_accessed=(2 * C * M + Cout * M) * act_bytes
        + Cout * C * conv_w.dtype.itemsize
        + Cout * 2 * 4,
    )

    # Monolithic single-block call: total working set < 1 MiB of VMEM, so a grid
    # would only add per-step overhead and break the single-pass BN statistics.
    out_cm = pl.pallas_call(
        fused_add_relu_conv1x1_bn_kernel,
        out_shape=jax.ShapeDtypeStruct((Cout, M), out_dtype),
        in_specs=[
            pl.BlockSpec((C, M), lambda: (0, 0)),
            pl.BlockSpec((C, M), lambda: (0, 0)),
            pl.BlockSpec((Cout, C), lambda: (0, 0)),
            pl.BlockSpec((Cout, 2), lambda: (0, 0)),
        ],
        out_specs=pl.BlockSpec((Cout, M), lambda: (0, 0)),
        cost_estimate=cost,
    )(x1, x2, w, gb)

    if N == 1:
        return out_cm.reshape(1, Cout, H, W)    # zero-cost
    return jnp.transpose(out_cm.reshape(Cout, N, H, W), (1, 0, 2, 3))


def reference_forward(x39, x47, conv_w, bn_gamma, bn_beta):
    y = jnp.maximum(x39 + x47, 0.0)
    z = jnp.einsum(
        "nchw,oc->nohw", y, conv_w.reshape(conv_w.shape[0], conv_w.shape[1])
    )
    mean = jnp.mean(z, axis=(0, 2, 3), keepdims=True)
    var = jnp.mean((z - mean) ** 2, axis=(0, 2, 3), keepdims=True)
    return (z - mean) * jax.lax.rsqrt(var + EPS) * bn_gamma.reshape(1, -1, 1, 1) \
        + bn_beta.reshape(1, -1, 1, 1)


if __name__ == "__main__":
    N, C, H, W = 1, 160, 14, 14
    Cout = 160

    key = jax.random.PRNGKey(0)
    k1, k2, k3 = jax.random.split(key, 3)
    x39 = jax.random.normal(k1, (N, C, H, W), dtype=jnp.float32)
    x47 = jax.random.normal(k2, (N, C, H, W), dtype=jnp.float32)
    # deterministic parameter init (PyTorch BN defaults: gamma=1, beta=0)
    conv_w = jax.random.normal(k3, (Cout, C, 1, 1), dtype=jnp.float32) * 0.05
    bn_gamma = jnp.ones((Cout,), dtype=jnp.float32)
    bn_beta = jnp.zeros((Cout,), dtype=jnp.float32)

    out = fused_forward(x39, x47, conv_w, bn_gamma, bn_beta)
    out = jax.block_until_ready(out)

    ref = reference_forward(x39, x47, conv_w, bn_gamma, bn_beta)
    assert out.shape == (N, Cout, H, W)
    # f32 operands end-to-end (no bf16 rounding in the kernel path); tolerance
    # left with headroom for MXU accumulation-order differences.
    assert jnp.allclose(out, ref, atol=1e-2, rtol=1e-2), "mismatch vs reference"

    print("KERNEL_OK")
</pallas_src>

<mosaic_0001>
module attributes {stable_mosaic.version = 11 : i64} {
  func.func @fused_add_relu_conv1x1_bn_kernel(%arg0: memref<160x196xf32, #tpu.memory_space<vmem>>, %arg1: memref<160x196xf32, #tpu.memory_space<vmem>>, %arg2: memref<160x160xf32, #tpu.memory_space<vmem>>, %arg3: memref<160x2xf32, #tpu.memory_space<vmem>>, %arg4: memref<160x196xf32, #tpu.memory_space<vmem>>) attributes {dimension_semantics = [], scalar_prefetch = 0 : i64, scratch_operands = 0 : i64, tpu.core_type = #tpu.core_type<tc>} {
    %c0 = arith.constant 0 : index
    %c0_0 = arith.constant 0 : index
    %0 = vector.load %arg0[%c0, %c0_0] : memref<160x196xf32, #tpu.memory_space<vmem>>, vector<160x196xf32>
    %c0_1 = arith.constant 0 : index
    %c0_2 = arith.constant 0 : index
    %1 = vector.load %arg1[%c0_1, %c0_2] : memref<160x196xf32, #tpu.memory_space<vmem>>, vector<160x196xf32>
    %2 = arith.addf %0, %1 : vector<160x196xf32>
    %cst = arith.constant 0.000000e+00 : f32
    %3 = vector.broadcast %cst : f32 to vector<160x196xf32>
    %4 = arith.maximumf %2, %3 : vector<160x196xf32>
    %c0_3 = arith.constant 0 : index
    %c0_4 = arith.constant 0 : index
    %5 = vector.load %arg2[%c0_3, %c0_4] : memref<160x160xf32, #tpu.memory_space<vmem>>, vector<160x160xf32>
    %cst_5 = arith.constant dense<0.000000e+00> : vector<160x196xf32>
    %6 = tpu.matmul %5, %4, %cst_5 {dimension_numbers = #tpu.dot_dimension_numbers<[1], [0], [0], [1], [0, 0, 1, 1], [], []>} : vector<160x160xf32>, vector<160x196xf32>, vector<160x196xf32> -> vector<160x196xf32>
    %cst_6 = arith.constant dense<0.000000e+00> : vector<160xf32>
    %7 = vector.multi_reduction <add>, %6, %cst_6 [1] : vector<160x196xf32> to vector<160xf32>
    %8 = vector.shape_cast %7 : vector<160xf32> to vector<160x1xf32>
    %cst_7 = arith.constant 0.00510204071 : f32
    %9 = vector.broadcast %cst_7 : f32 to vector<160x1xf32>
    %10 = arith.mulf %8, %9 : vector<160x1xf32>
    %11 = vector.broadcast %10 : vector<160x1xf32> to vector<160x196xf32>
    %12 = arith.subf %6, %11 : vector<160x196xf32>
    %13 = arith.mulf %12, %12 : vector<160x196xf32>
    %cst_8 = arith.constant dense<0.000000e+00> : vector<160xf32>
    %14 = vector.multi_reduction <add>, %13, %cst_8 [1] : vector<160x196xf32> to vector<160xf32>
    %15 = vector.shape_cast %14 : vector<160xf32> to vector<160x1xf32>
    %cst_9 = arith.constant 0.00510204071 : f32
    %16 = vector.broadcast %cst_9 : f32 to vector<160x1xf32>
    %17 = arith.mulf %15, %16 : vector<160x1xf32>
    %c0_10 = arith.constant 0 : index
    %c0_11 = arith.constant 0 : index
    %18 = vector.load %arg3[%c0_10, %c0_11] : memref<160x2xf32, #tpu.memory_space<vmem>>, vector<160x1xf32>
    %c0_12 = arith.constant 0 : index
    %c1 = arith.constant 1 : index
    %19 = vector.load %arg3[%c0_12, %c1] : memref<160x2xf32, #tpu.memory_space<vmem>>, vector<160x1xf32>
    %cst_13 = arith.constant 9.99999974E-6 : f32
    %20 = vector.broadcast %cst_13 : f32 to vector<160x1xf32>
    %21 = arith.addf %17, %20 : vector<160x1xf32>
    %22 = math.rsqrt %21 : vector<160x1xf32>
    %23 = arith.mulf %18, %22 : vector<160x1xf32>
    %24 = vector.broadcast %23 : vector<160x1xf32> to vector<160x196xf32>
    %25 = arith.mulf %12, %24 : vector<160x196xf32>
    %26 = vector.broadcast %19 : vector<160x1xf32> to vector<160x196xf32>
    %27 = arith.addf %25, %26 : vector<160x196xf32>
    %c0_14 = arith.constant 0 : index
    %c0_15 = arith.constant 0 : index
    %28 = vector.load %arg4[%c0_14, %c0_15] : memref<160x196xf32, #tpu.memory_space<vmem>>, vector<160x196xf32>
    tpu.vector_store %arg4[%c0_14, %c0_15], %27 {strides = array<i32>} : memref<160x196xf32, #tpu.memory_space<vmem>>, vector<160x196xf32>,
    return
  }
}

</mosaic_0001>

<bundles_post_ra>
// kernel: tpu_custom_call.1
= control target key start
LH: loop header
LB: loop body
LE: loop exit
PB: predicated region body
PF: predicated region fallthrough
CT: control target
= control target key end

     0   :  { %9 = vsyncpa [#allocation3], 0  ;;  %s2168_s0 = inlined_call_operand.hbm [shape: f32[160,196], index: 0, kind: input, shape index: {}]   ;;  %s2169_s1 = inlined_call_operand.hbm [shape: f32[160,196], index: 1, kind: input, shape index: {}]   ;;  %s2170_s2 = inlined_call_operand.hbm [shape: f32[160,160], index: 2, kind: input, shape index: {}]   ;;  %s2171_s3 = inlined_call_operand.vmem [shape: f32[160,2], index: 3, kind: input, shape index: {}]   ;;  %s2172_s4 = inlined_call_operand.hbm [shape: f32[160,196], index: 4, kind: output, shape index: {}]  }
   0x1   :  { %10 = vsyncpa [#allocation6], 0 }
   0x2   :  { %11 = vsyncpa [#allocation4], 0  ;;  %s1432_s15 = smov [#allocation5]   ;;  %s1433_s17 = smov [#allocation2]  }
   0x3   :  { %s29_s16 = sshll.u32 %s1432_s15, 4  ;;  %s17_s18 = sshll.u32 %s1433_s17, 4  ;;  %s30_s16 = int_to_ptr.vmem [resolvable:$true] %s29_s16  ;;  %s1465_s18 = int_to_ptr.vmem [resolvable:$true] %s17_s18 }
   0x4   :  { %s1338_s21 = scalar_lea.hbm %s2169_s1, 5120 }
   0x5   :  { %p1339_p0 = scmp.ne.s32.totalorder %s2169_s1, %s1338_s21  ;;  %p1342_p1 = scmp.lt.u32.totalorder %s1338_s21, %s2169_s1 }
   0x7   :  { %p1344_p2 = pnand %p1342_p1, %p1339_p0 }
   0x9   :  { %1347 = shalt.err (!%p1344_p2)
}
   0xa   :  { %s1348_s26 = scalar_lea.vmem %s30_s16, 5120  ;;  %p1353_p4 = scmp.lt.s32.totalorder %s30_s16, %s30_s16 }
   0xb   :  { %p1349_p3 = scmp.ne.s32.totalorder %s30_s16, %s1348_s26  ;;  %p1354_p5 = scmp.lt.s32.totalorder %s1348_s26, %s1348_s26 }
   0xd   :  { %p1355_p6 = por %p1354_p5, %p1353_p4 }
   0xf   :  { %p1356_p7 = pnand %p1355_p6, %p1349_p3 }
  0x11   :  { %1359 = shalt.err (!%p1356_p7)
}
  0x12   :  { %s1434_s27 = smov 256   ;;  %s1435_s28 = smov 16  }
  0x13   :  { %35 = dma.hbm_to_vmem [thread:$0]  %s2169_s1, 5120, %s30_s16, [#allocation6], %s1434_s27, %s1434_s27, %s1435_s28  }
  0x14   :  { %s1360_s7 = scalar_lea.hbm %s2168_s0, 5120 }
  0x15   :  { %p1361_p8 = scmp.ne.s32.totalorder %s2168_s0, %s1360_s7  ;;  %p1364_p9 = scmp.lt.u32.totalorder %s1360_s7, %s2168_s0 }
  0x17   :  { %p1366_p10 = pnand %p1364_p9, %p1361_p8 }
  0x19   :  { %1369 = shalt.err (!%p1366_p10)
}
  0x1a   :  { %s1370_s12 = scalar_lea.vmem %s1465_s18, 5120  ;;  %p1375_p12 = scmp.lt.s32.totalorder %s1465_s18, %s1465_s18 }
  0x1b   :  { %p1371_p11 = scmp.ne.s32.totalorder %s1465_s18, %s1370_s12  ;;  %p1376_p13 = scmp.lt.s32.totalorder %s1370_s12, %s1370_s12 }
  0x1d   :  { %p1377_p0 = por %p1376_p13, %p1375_p12 }
  0x1f   :  { %p1378_p1 = pnand %p1377_p0, %p1371_p11 }
  0x21   :  { %1381 = shalt.err (!%p1378_p1)
}
  0x22   :  { %23 = dma.hbm_to_vmem [thread:$0]  %s2168_s0, 5120, %s1465_s18, [#allocation3], %s1434_s27, %s1434_s27, %s1435_s28  }
  0x23   :  { %s1436_s14 = smov [#allocation7]   ;;  %s1382_s19 = scalar_lea.hbm %s2170_s2, 5120 }
  0x24   :  { %s41_s15 = sshll.u32 %s1436_s14, 4  ;;  %p1383_p2 = scmp.ne.s32.totalorder %s2170_s2, %s1382_s19  ;;  %s42_s15 = int_to_ptr.vmem [resolvable:$true] %s41_s15 }
  0x25   :  { %p1386_p3 = scmp.lt.u32.totalorder %s1382_s19, %s2170_s2 }
  0x27   :  { %p1388_p4 = pnand %p1386_p3, %p1383_p2 }
  0x29   :  { %1391 = shalt.err (!%p1388_p4)
}
  0x2a   :  { %s1392_s24 = scalar_lea.vmem %s42_s15, 5120  ;;  %p1397_p6 = scmp.lt.s32.totalorder %s42_s15, %s42_s15 }
  0x2b   :  { %p1393_p5 = scmp.ne.s32.totalorder %s42_s15, %s1392_s24  ;;  %p1398_p7 = scmp.lt.s32.totalorder %s1392_s24, %s1392_s24 }
  0x2d   :  { %p1399_p8 = por %p1398_p7, %p1397_p6 }
  0x2f   :  { %p1400_p9 = pnand %p1399_p8, %p1393_p5 }
  0x31   :  { %1403 = shalt.err (!%p1400_p9)
}
  0x32   :  { %47 = dma.hbm_to_vmem [thread:$0]  %s2170_s2, 5120, %s42_s15, [#allocation6], %s1434_s27, %s1434_s27, %s1435_s28  }
  0x33   :  { %1426 = dma.done.wait [#allocation3], 5120  }
  0x34   :  { %1427 = vsyncadd [#allocation3], 4294962176 }
  0x35   :  { %1428 = dma.done.wait [#allocation6], 10240  }
  0x36   :  { %1429 = vsyncadd [#allocation6], 4294957056  ;;  %v2173_v0 = vmov 1   ;;  %v60_v1 = vld [vmem:[#allocation2 + $0x8] sm:$0xff]  ;;  %v62_v2 = vld [vmem:[#allocation2 + $0x18] sm:$0xff]  ;;  %vm259_vm0 = vcmask 261120  }
  0x37   :  { %1292 = vset.pattern.permute.xlu1 %v2173_v0  ;;  %1293 = vset.pattern.permute.xlu0 %v2173_v0  ;;  %v100_v3 = vld [vmem:[#allocation5 + $0x8] sm:$0xff]  ;;  %v102_v4 = vld [vmem:[#allocation5 + $0x18] sm:$0xff]  ;;  %v59_v6 = vld [vmem:[#allocation2] sm:$0xff]  ;;  %vm505_vm1 = vcmask 556032  }
  0x38   :  { %v140_v5 = vadd.f32 %v100_v3, %v60_v1  ;;  %v61_v7 = vld [vmem:[#allocation2 + $0x10] sm:$0xff]  ;;  %v142_v8 = vadd.f32 %v102_v4, %v62_v2  ;;  %v99_v9 = vld [vmem:[#allocation5] sm:$0xff]  ;;  %v64_v11 = vld [vmem:[#allocation2 + $0x28] sm:$0xff] }
  0x39   :  { %v101_v10 = vld [vmem:[#allocation5 + $0x10] sm:$0xff]  ;;  %v139_v13 = vadd.f32 %v99_v9, %v59_v6  ;;  %v66_v15 = vld [vmem:[#allocation2 + $0x38] sm:$0xff]  ;;  %v104_v16 = vld [vmem:[#allocation5 + $0x28] sm:$0xff] }
  0x3a   :  { %v180_v12 = vmax.f32 %v140_v5, 0.0  ;;  %v141_v14 = vadd.f32 %v101_v10, %v61_v7  ;;  %v106_v17 = vld [vmem:[#allocation5 + $0x38] sm:$0xff]  ;;  %v182_v18 = vmax.f32 %v142_v8, 0.0  ;;  %v144_v19 = vadd.f32 %v104_v16, %v64_v11  ;;  %v63_v21 = vld [vmem:[#allocation2 + $0x20] sm:$0xff]  ;;  %v65_v22 = vld [vmem:[#allocation2 + $0x30] sm:$0xff] }
  0x3b   :  { %v146_v20 = vadd.f32 %v106_v17, %v66_v15  ;;  %v103_v23 = vld [vmem:[#allocation5 + $0x20] sm:$0xff]  ;;  %v179_v24 = vmax.f32 %v139_v13, 0.0  ;;  %v105_v26 = vld [vmem:[#allocation5 + $0x30] sm:$0xff]  ;;  %v68_v28 = vld [vmem:[#allocation2 + $0x48] sm:$0xff] }
  0x3c   :  { %v181_v25 = vmax.f32 %v141_v14, 0.0  ;;  %v143_v27 = vadd.f32 %v103_v23, %v63_v21  ;;  %v70_v29 = vld [vmem:[#allocation2 + $0x58] sm:$0xff]  ;;  %v1224_v30 = vpack.c.bf16 %v182_v18, %v180_v12  ;;  %v184_v31 = vmax.f32 %v144_v19, 0.0  ;;  %v108_v34 = vld [vmem:[#allocation5 + $0x48] sm:$0xff]  ;;  %v67_v36 = vld [vmem:[#allocation2 + $0x40] sm:$0xff] }
  0x3d   :  { %v186_v32 = vmax.f32 %v146_v20, 0.0  ;;  %v145_v33 = vadd.f32 %v105_v26, %v65_v22  ;;  %v110_v35 = vld [vmem:[#allocation5 + $0x58] sm:$0xff]  ;;  %v148_v39 = vadd.f32 %v108_v34, %v68_v28  ;;  %v69_v41 = vld [vmem:[#allocation2 + $0x50] sm:$0xff]  ;;  %v107_v42 = vld [vmem:[#allocation5 + $0x40] sm:$0xff] }
  0x3e   :  { %v1226_v37 = vpack.c.bf16 %v181_v25, %v179_v24  ;;  %v183_v38 = vmax.f32 %v143_v27, 0.0  ;;  %v150_v40 = vadd.f32 %v110_v35, %v70_v29  ;;  %v109_v43 = vld [vmem:[#allocation5 + $0x50] sm:$0xff]  ;;  %1225 = vmatprep.subr.bf16.mxu0 %v1224_v30  ;;  %1264 = vmatprep.subr.bf16.mxu1 %v1224_v30  ;;  %v147_v46 = vadd.f32 %v107_v42, %v67_v36  ;;  %v72_v48 = vld [vmem:[#allocation2 + $0x68] sm:$0xff]  ;;  %v74_v49 = vld [vmem:[#allocation2 + $0x78] sm:$0xff] }
  0x3f   :  { %v1228_v44 = vpack.c.bf16 %v186_v32, %v184_v31  ;;  %v185_v45 = vmax.f32 %v145_v33, 0.0  ;;  %v149_v47 = vadd.f32 %v109_v43, %v69_v41  ;;  %v112_v50 = vld [vmem:[#allocation5 + $0x68] sm:$0xff]  ;;  %v188_v51 = vmax.f32 %v148_v39, 0.0  ;;  %v114_v53 = vld [vmem:[#allocation5 + $0x78] sm:$0xff]  ;;  %v71_v55 = vld [vmem:[#allocation2 + $0x60] sm:$0xff] }
  0x40   :  { %1227 = vmatpush1.bf16.msra.mxu0 %v1226_v37  ;;  %1274 = vmatpush1.bf16.msra.mxu1 %v1226_v37  ;;  %v190_v52 = vmax.f32 %v150_v40, 0.0  ;;  %v152_v54 = vadd.f32 %v112_v50, %v72_v48  ;;  %v73_v56 = vld [vmem:[#allocation2 + $0x70] sm:$0xff]  ;;  %v187_v58 = vmax.f32 %v147_v46, 0.0  ;;  %v154_v60 = vadd.f32 %v114_v53, %v74_v49  ;;  %v111_v61 = vld [vmem:[#allocation5 + $0x60] sm:$0xff]  ;;  %v76_v63 = vld [vmem:[#allocation2 + $0x88] sm:$0xff] }
  0x41   :  { %1229 = vmatprep.subr.bf16.mxu0 %v1228_v44  ;;  %1265 = vmatprep.subr.bf16.mxu1 %v1228_v44  ;;  %v1230_v57 = vpack.c.bf16 %v185_v45, %v183_v38  ;;  %v189_v59 = vmax.f32 %v149_v47, 0.0  ;;  %v113_v62 = vld [vmem:[#allocation5 + $0x70] sm:$0xff]  ;;  %v151_v3 = vadd.f32 %v111_v61, %v71_v55  ;;  %v78_v5 = vld [vmem:[#allocation2 + $0x98] sm:$0xff]  ;;  %v116_v6 = vld [vmem:[#allocation5 + $0x88] sm:$0xff] }
  0x42   :  { %v1232_v1 = vpack.c.bf16 %v190_v52, %v188_v51  ;;  %v192_v2 = vmax.f32 %v152_v54, 0.0  ;;  %v153_v4 = vadd.f32 %v113_v62, %v73_v56  ;;  %v118_v7 = vld [vmem:[#allocation5 + $0x98] sm:$0xff]  ;;  %v194_v8 = vmax.f32 %v154_v60, 0.0  ;;  %v75_v11 = vld [vmem:[#allocation2 + $0x80] sm:$0xff]  ;;  %v77_v12 = vld [vmem:[#allocation2 + $0x90] sm:$0xff] }
  0x43   :  { %v156_v9 = vadd.f32 %v116_v6, %v76_v63  ;;  %v158_v10 = vadd.f32 %v118_v7, %v78_v5  ;;  %v115_v13 = vld [vmem:[#allocation5 + $0x80] sm:$0xff]  ;;  %v1234_v14 = vpack.c.bf16 %v189_v59, %v187_v58  ;;  %v191_v15 = vmax.f32 %v151_v3, 0.0  ;;  %v117_v17 = vld [vmem:[#allocation5 + $0x90] sm:$0xff]  ;;  %v80_v19 = vld [vmem:[#allocation2 + $0xa8] sm:$0xff] }
  0x44   :  { %1231 = vmatpush1.bf16.msra.mxu0 %v1230_v57  ;;  %1275 = vmatpush1.bf16.msra.mxu1 %v1230_v57  ;;  %v193_v16 = vmax.f32 %v153_v4, 0.0  ;;  %v155_v18 = vadd.f32 %v115_v13, %v75_v11  ;;  %v82_v20 = vld [vmem:[#allocation2 + $0xb8] sm:$0xff]  ;;  %v1236_v21 = vpack.c.bf16 %v194_v8, %v192_v2  ;;  %v157_v24 = vadd.f32 %v117_v17, %v77_v12  ;;  %v120_v25 = vld [vmem:[#allocation5 + $0xa8] sm:$0xff]  ;;  %v79_v27 = vld [vmem:[#allocation2 + $0xa0] sm:$0xff] }
  0x45   :  { %1233 = vmatprep.subr.bf16.mxu0 %v1232_v1  ;;  %1266 = vmatprep.subr.bf16.mxu1 %v1232_v1  ;;  %v196_v22 = vmax.f32 %v156_v9, 0.0  ;;  %v198_v23 = vmax.f32 %v158_v10, 0.0  ;;  %v122_v26 = vld [vmem:[#allocation5 + $0xb8] sm:$0xff]  ;;  %v160_v28 = vadd.f32 %v120_v25, %v80_v19  ;;  %v81_v30 = vld [vmem:[#allocation2 + $0xb0] sm:$0xff]  ;;  %v119_v31 = vld [vmem:[#allocation5 + $0xa0] sm:$0xff] }
  0x46   :  { %v162_v29 = vadd.f32 %v122_v26, %v82_v20  ;;  %v121_v32 = vld [vmem:[#allocation5 + $0xb0] sm:$0xff]  ;;  %v1238_v33 = vpack.c.bf16 %v193_v16, %v191_v15  ;;  %v195_v34 = vmax.f32 %v155_v18, 0.0  ;;  %v197_v35 = vmax.f32 %v157_v24, 0.0  ;;  %v84_v36 = vld [vmem:[#allocation2 + $0xc8] sm:$0xff]  ;;  %v86_v37 = vld [vmem:[#allocation2 + $0xd8] sm:$0xff] }
  0x47   :  { %v124_v38 = vld [vmem:[#allocation5 + $0xc8] sm:$0xff]  ;;  %v1240_v39 = vpack.c.bf16 %v198_v23, %v196_v22  ;;  %v159_v40 = vadd.f32 %v119_v31, %v79_v27  ;;  %v161_v41 = vadd.f32 %v121_v32, %v81_v30  ;;  %v126_v42 = vld [vmem:[#allocation5 + $0xd8] sm:$0xff]  ;;  %v83_v43 = vld [vmem:[#allocation2 + $0xc0] sm:$0xff]  ;;  %v200_v45 = vmax.f32 %v160_v28, 0.0 }
  0x48   :  { %1235 = vmatpush1.bf16.msra.mxu0 %v1234_v14  ;;  %1276 = vmatpush1.bf16.msra.mxu1 %v1234_v14  ;;  %v85_v44 = vld [vmem:[#allocation2 + $0xd0] sm:$0xff]  ;;  %v202_v46 = vmax.f32 %v162_v29, 0.0  ;;  %v164_v47 = vadd.f32 %v124_v38, %v84_v36  ;;  %v166_v48 = vadd.f32 %v126_v42, %v86_v37  ;;  %v123_v49 = vld [vmem:[#allocation5 + $0xc0] sm:$0xff]  ;;  %v88_v51 = vld [vmem:[#allocation2 + $0xe8] sm:$0xff]  ;;  %v1242_v55 = vpack.c.bf16 %v197_v35, %v195_v34 }
  0x49   :  { %1237 = vmatprep.subr.bf16.mxu0 %v1236_v21  ;;  %1267 = vmatprep.subr.bf16.mxu1 %v1236_v21  ;;  %v125_v50 = vld [vmem:[#allocation5 + $0xd0] sm:$0xff]  ;;  %v90_v52 = vld [vmem:[#allocation2 + $0xf8] sm:$0xff]  ;;  %v128_v53 = vld [vmem:[#allocation5 + $0xe8] sm:$0xff]  ;;  %v163_v56 = vadd.f32 %v123_v49, %v83_v43  ;;  %v199_v59 = vmax.f32 %v159_v40, 0.0  ;;  %v201_v60 = vmax.f32 %v161_v41, 0.0 }
  0x4a   :  { %v130_v54 = vld [vmem:[#allocation5 + $0xf8] sm:$0xff]  ;;  %v165_v57 = vadd.f32 %v125_v50, %v85_v44  ;;  %v87_v58 = vld [vmem:[#allocation2 + $0xe0] sm:$0xff]  ;;  %v168_v61 = vadd.f32 %v128_v53, %v88_v51  ;;  %v89_v63 = vld [vmem:[#allocation2 + $0xf0] sm:$0xff]  ;;  %v1244_v3 = vpack.c.bf16 %v202_v46, %v200_v45  ;;  %v204_v4 = vmax.f32 %v164_v47, 0.0 }
  0x4b   :  { %v170_v62 = vadd.f32 %v130_v54, %v90_v52  ;;  %v127_v1 = vld [vmem:[#allocation5 + $0xe0] sm:$0xff]  ;;  %v129_v2 = vld [vmem:[#allocation5 + $0xf0] sm:$0xff]  ;;  %v206_v5 = vmax.f32 %v166_v48, 0.0  ;;  %v92_v6 = vld [vmem:[#allocation2 + $0x108] sm:$0xff]  ;;  %v203_v10 = vmax.f32 %v163_v56, 0.0  ;;  %v1246_v15 = vpack.c.bf16 %v201_v60, %v199_v59 }
  0x4c   :  { %1239 = vmatpush1.bf16.msra.mxu0 %v1238_v33  ;;  %1277 = vmatpush1.bf16.msra.mxu1 %v1238_v33  ;;  %v94_v7 = vld [vmem:[#allocation2 + $0x118] sm:$0xff]  ;;  %v132_v8 = vld [vmem:[#allocation5 + $0x108] sm:$0xff]  ;;  %v205_v11 = vmax.f32 %v165_v57, 0.0  ;;  %v167_v12 = vadd.f32 %v127_v1, %v87_v58  ;;  %v169_v13 = vadd.f32 %v129_v2, %v89_v63  ;;  %v91_v14 = vld [vmem:[#allocation2 + $0x100] sm:$0xff]  ;;  %v208_v16 = vmax.f32 %v168_v61, 0.0 }
  0x4d   :  { %1241 = vmatprep.subr.bf16.mxu0 %v1240_v39  ;;  %1268 = vmatprep.subr.bf16.mxu1 %v1240_v39  ;;  %v134_v9 = vld [vmem:[#allocation5 + $0x118] sm:$0xff]  ;;  %v210_v17 = vmax.f32 %v170_v62, 0.0  ;;  %v93_v18 = vld [vmem:[#allocation2 + $0x110] sm:$0xff]  ;;  %v131_v19 = vld [vmem:[#allocation5 + $0x100] sm:$0xff]  ;;  %v1248_v21 = vpack.c.bf16 %v206_v5, %v204_v4  ;;  %v172_v22 = vadd.f32 %v132_v8, %v92_v6 }
  0x4e   :  { %v133_v20 = vld [vmem:[#allocation5 + $0x110] sm:$0xff]  ;;  %v174_v23 = vadd.f32 %v134_v9, %v94_v7  ;;  %v96_v24 = vld [vmem:[#allocation2 + $0x128] sm:$0xff]  ;;  %v98_v25 = vld [vmem:[#allocation2 + $0x138] sm:$0xff]  ;;  %v1250_v30 = vpack.c.bf16 %v205_v11, %v203_v10  ;;  %v207_v31 = vmax.f32 %v167_v12, 0.0  ;;  %v209_v32 = vmax.f32 %v169_v13, 0.0 }
  0x4f   :  { %v220_v26 = vld [vmem:[#allocation7 + $0x8] sm:$0xff]  ;;  %v138_v28 = vld [vmem:[#allocation5 + $0x138] sm:$0xff]  ;;  %v1252_v33 = vpack.c.bf16 %v210_v17, %v208_v16  ;;  %v171_v34 = vadd.f32 %v131_v19, %v91_v14  ;;  %v173_v35 = vadd.f32 %v133_v20, %v93_v18  ;;  %v95_v36 = vld [vmem:[#allocation2 + $0x120] sm:$0xff]  ;;  %v212_v37 = vmax.f32 %v172_v22, 0.0 }
  0x50   :  { %1243 = vmatpush1.bf16.msra.mxu0 %v1242_v55  ;;  %1278 = vmatpush1.bf16.msra.mxu1 %v1242_v55  ;;  %v136_v27 = vld [vmem:[#allocation5 + $0x128] sm:$0xff]  ;;  %v214_v38 = vmax.f32 %v174_v23, 0.0  ;;  %v178_v40 = vadd.f32 %v138_v28, %v98_v25  ;;  %v97_v41 = vld [vmem:[#allocation2 + $0x130] sm:$0xff]  ;;  %v135_v42 = vld [vmem:[#allocation5 + $0x120] sm:$0xff]  ;;  %v1254_v44 = vpack.c.bf16 %v209_v32, %v207_v31 }
  0x51   :  { %1245 = vmatprep.subr.bf16.mxu0 %v1244_v3  ;;  %1269 = vmatprep.subr.bf16.mxu1 %v1244_v3  ;;  %v240_v29 = vld [vmem:[#allocation7 + $0xa8] sm:$0xff]  ;;  %v176_v39 = vadd.f32 %v136_v27, %v96_v24  ;;  %v137_v43 = vld [vmem:[#allocation5 + $0x130] sm:$0xff]  ;;  %v211_v45 = vmax.f32 %v171_v34, 0.0  ;;  %v213_v46 = vmax.f32 %v173_v35, 0.0  ;;  %v175_v47 = vadd.f32 %v135_v42, %v95_v36  ;;  %v1524_v56 = vld [vmem:[%s2171_s3] sm:$0xff] }
  0x52   :  { %1204 = vmatprep.mubr.msk.f32.mxu0 %vm259_vm0, %v220_v26  ;;  %1214 = vmatprep.mubr.msk.f32.mxu1 %vm259_vm0, %v240_v29  ;;  %v177_v48 = vadd.f32 %v137_v43, %v97_v41  ;;  %v1256_v49 = vpack.c.bf16 %v214_v38, %v212_v37  ;;  %v218_v51 = vmax.f32 %v178_v40, 0.0  ;;  %v1529_v58 = vld [vmem:[%s2171_s3 + $0x8] sm:$0xff]  ;;  %v1536_v59 = vld [vmem:[%s2171_s3 + $0x10] sm:$0xff]  ;;  %v219_v60 = vld [vmem:[#allocation7] sm:$0xff] }
  0x53   :  { %v216_v50 = vmax.f32 %v176_v39, 0.0  ;;  %v1258_v52 = vpack.c.bf16 %v213_v46, %v211_v45  ;;  %v215_v53 = vmax.f32 %v175_v47, 0.0  ;;  %1008 = vperm.xlu1 %1292, %v1524_v56   ;;  %1013 = vperm.xlu0 %1293, %v1529_v58   ;;  %v239_v61 = vld [vmem:[#allocation7 + $0xa0] sm:$0xff]  ;;  %v222_v62 = vld [vmem:[#allocation7 + $0x18] sm:$0xff]  ;;  %v221_v2 = vld [vmem:[#allocation7 + $0x10] sm:$0xff] }
  0x54   :  { %1247 = vmatpush1.bf16.msra.mxu0 %v1246_v15  ;;  %1279 = vmatpush1.bf16.msra.mxu1 %v1246_v15  ;;  %v217_v54 = vmax.f32 %v177_v48, 0.0  ;;  %v242_v63 = vld [vmem:[#allocation7 + $0xb8] sm:$0xff]  ;;  %v241_v3 = vld [vmem:[#allocation7 + $0xb0] sm:$0xff]  ;;  %v224_v4 = vld [vmem:[#allocation7 + $0x28] sm:$0xff] }
  0x55   :  { %1249 = vmatprep.subr.bf16.mxu0 %v1248_v21  ;;  %1270 = vmatprep.subr.bf16.mxu1 %v1248_v21  ;;  %v1260_v55 = vpack.c.bf16 %v218_v51, %v216_v50  ;;  %v1542_v1 = vld [vmem:[%s2171_s3 + $0x18] sm:$0xff]  ;;  %v244_v5 = vld [vmem:[#allocation7 + $0xc8] sm:$0xff]  ;;  %v223_v6 = vld [vmem:[#allocation7 + $0x20] sm:$0xff] }
  0x56   :  { %v1262_v57 = vpack.c.bf16 %v217_v54, %v215_v53  ;;  %v243_v7 = vld [vmem:[#allocation7 + $0xc0] sm:$0xff]  ;;  %v226_v8 = vld [vmem:[#allocation7 + $0x38] sm:$0xff]  ;;  %v225_v10 = vld [vmem:[#allocation7 + $0x30] sm:$0xff] }
  0x57   :  { %1018 = vperm.xlu1 %1292, %v1536_v59   ;;  %v246_v9 = vld [vmem:[#allocation7 + $0xd8] sm:$0xff]  ;;  %v245_v11 = vld [vmem:[#allocation7 + $0xd0] sm:$0xff]  ;;  %v228_v12 = vld [vmem:[#allocation7 + $0x48] sm:$0xff] }
  0x58   :  { %1251 = vmatpush1.bf16.msra.mxu0 %v1250_v30  ;;  %1280 = vmatpush1.bf16.msra.mxu1 %v1250_v30  ;;  %v248_v13 = vld [vmem:[#allocation7 + $0xe8] sm:$0xff]  ;;  %v227_v14 = vld [vmem:[#allocation7 + $0x40] sm:$0xff]  ;;  %v230_v16 = vld [vmem:[#allocation7 + $0x58] sm:$0xff] }
  0x59   :  { %1253 = vmatprep.subr.bf16.mxu0 %v1252_v33  ;;  %1271 = vmatprep.subr.bf16.mxu1 %v1252_v33  ;;  %v247_v15 = vld [vmem:[#allocation7 + $0xe0] sm:$0xff]  ;;  %v250_v17 = vld [vmem:[#allocation7 + $0xf8] sm:$0xff]  ;;  %v229_v18 = vld [vmem:[#allocation7 + $0x50] sm:$0xff] }
  0x5a   :  { %v249_v19 = vld [vmem:[#allocation7 + $0xf0] sm:$0xff]  ;;  %v232_v20 = vld [vmem:[#allocation7 + $0x68] sm:$0xff]  ;;  %v231_v22 = vld [vmem:[#allocation7 + $0x60] sm:$0xff] }
  0x5b   :  { %1023 = vperm.xlu1 %1292, %v1542_v1   ;;  %v252_v21 = vld [vmem:[#allocation7 + $0x108] sm:$0xff]  ;;  %v251_v23 = vld [vmem:[#allocation7 + $0x100] sm:$0xff]  ;;  %v234_v24 = vld [vmem:[#allocation7 + $0x78] sm:$0xff] }
  0x5c   :  { %1255 = vmatpush1.bf16.msra.mxu0 %v1254_v44  ;;  %1281 = vmatpush1.bf16.msra.mxu1 %v1254_v44  ;;  %v254_v25 = vld [vmem:[#allocation7 + $0x118] sm:$0xff]  ;;  %v233_v26 = vld [vmem:[#allocation7 + $0x70] sm:$0xff]  ;;  %v236_v28 = vld [vmem:[#allocation7 + $0x88] sm:$0xff] }
  0x5d   :  { %1257 = vmatprep.subr.bf16.mxu0 %v1256_v49  ;;  %1272 = vmatprep.subr.bf16.mxu1 %v1256_v49  ;;  %v253_v27 = vld [vmem:[#allocation7 + $0x110] sm:$0xff]  ;;  %v256_v29 = vld [vmem:[#allocation7 + $0x128] sm:$0xff]  ;;  %v235_v30 = vld [vmem:[#allocation7 + $0x80] sm:$0xff] }
  0x5e   :  { %v255_v31 = vld [vmem:[#allocation7 + $0x120] sm:$0xff]  ;;  %v238_v32 = vld [vmem:[#allocation7 + $0x98] sm:$0xff]  ;;  %v237_v34 = vld [vmem:[#allocation7 + $0x90] sm:$0xff] }
  0x5f   :  { %v258_v33 = vld [vmem:[#allocation7 + $0x138] sm:$0xff]  ;;  %v257_v35 = vld [vmem:[#allocation7 + $0x130] sm:$0xff] }
  0x60   :  { %1259 = vmatpush1.bf16.msra.mxu0 %v1258_v52  ;;  %1282 = vmatpush1.bf16.msra.mxu1 %v1258_v52 }
  0x61   :  { %1261 = vmatprep.subr.bf16.mxu0 %v1260_v55  ;;  %1273 = vmatprep.subr.bf16.mxu1 %v1260_v55 }
  0x64   :  { %1263 = vmatpush1.bf16.msra.mxu0 %v1262_v57  ;;  %1283 = vmatpush1.bf16.msra.mxu1 %v1262_v57 }
  0x67   :  { %385 = vmatmul.mubr.f32.vlgmr.msra.gmra.mrb[0].mxu0 %v219_v60  ;;  %445 = vmatmul.mubr.f32.vlgmr.msra.gmra.mrb[0].mxu1 %v239_v61 }
  0x68   :  { %1205 = vmatprep.mubr.msk.f32.mxu0 %vm259_vm0, %v222_v62  ;;  %1215 = vmatprep.mubr.msk.f32.mxu1 %vm259_vm0, %v242_v63 }
  0x6b   :  { %391 = vmatmul.mubr.f32.gmra.mrb[2].mxu0 %v221_v2  ;;  %451 = vmatmul.mubr.f32.gmra.mrb[2].mxu1 %v241_v3 }
  0x6c   :  { %1206 = vmatprep.mubr.msk.f32.mxu0 %vm259_vm0, %v224_v4  ;;  %1216 = vmatprep.mubr.msk.f32.mxu1 %vm259_vm0, %v244_v5 }
  0x6f   :  { %397 = vmatmul.mubr.f32.gmra.mrb[4].mxu0 %v223_v6  ;;  %457 = vmatmul.mubr.f32.gmra.mrb[4].mxu1 %v243_v7 }
  0x70   :  { %1207 = vmatprep.mubr.msk.f32.mxu0 %vm259_vm0, %v226_v8  ;;  %1217 = vmatprep.mubr.msk.f32.mxu1 %vm259_vm0, %v246_v9 }
  0x73   :  { %403 = vmatmul.mubr.f32.gmra.mrb[6].mxu0 %v225_v10  ;;  %463 = vmatmul.mubr.f32.gmra.mrb[6].mxu1 %v245_v11 }
  0x74   :  { %1208 = vmatprep.mubr.msk.f32.mxu0 %vm259_vm0, %v228_v12  ;;  %1218 = vmatprep.mubr.msk.f32.mxu1 %vm259_vm0, %v248_v13 }
  0x77   :  { %409 = vmatmul.mubr.f32.gmra.mrb[8].mxu0 %v227_v14  ;;  %469 = vmatmul.mubr.f32.gmra.mrb[8].mxu1 %v247_v15 }
  0x78   :  { %1209 = vmatprep.mubr.msk.f32.mxu0 %vm259_vm0, %v230_v16  ;;  %1219 = vmatprep.mubr.msk.f32.mxu1 %vm259_vm0, %v250_v17 }
  0x7b   :  { %415 = vmatmul.mubr.f32.gmra.mrb[10].mxu0 %v229_v18  ;;  %475 = vmatmul.mubr.f32.gmra.mrb[10].mxu1 %v249_v19 }
  0x7c   :  { %1210 = vmatprep.mubr.msk.f32.mxu0 %vm259_vm0, %v232_v20  ;;  %1220 = vmatprep.mubr.msk.f32.mxu1 %vm259_vm0, %v252_v21 }
  0x7f   :  { %421 = vmatmul.mubr.f32.gmra.mrb[12].mxu0 %v231_v22  ;;  %481 = vmatmul.mubr.f32.gmra.mrb[12].mxu1 %v251_v23 }
  0x80   :  { %1211 = vmatprep.mubr.msk.f32.mxu0 %vm259_vm0, %v234_v24  ;;  %1221 = vmatprep.mubr.msk.f32.mxu1 %vm259_vm0, %v254_v25 }
  0x83   :  { %427 = vmatmul.mubr.f32.gmra.mrb[14].mxu0 %v233_v26  ;;  %487 = vmatmul.mubr.f32.gmra.mrb[14].mxu1 %v253_v27 }
  0x84   :  { %1212 = vmatprep.mubr.msk.f32.mxu0 %vm259_vm0, %v236_v28  ;;  %1222 = vmatprep.mubr.msk.f32.mxu1 %vm259_vm0, %v256_v29 }
  0x87   :  { %433 = vmatmul.mubr.f32.gmra.mrb[16].mxu0 %v235_v30  ;;  %493 = vmatmul.mubr.f32.gmra.mrb[16].mxu1 %v255_v31 }
  0x88   :  { %1213 = vmatprep.mubr.msk.f32.mxu0 %vm259_vm0, %v238_v32  ;;  %1223 = vmatprep.mubr.msk.f32.mxu1 %vm259_vm0, %v258_v33 }
  0x8b   :  { %439 = vmatmul.mubr.f32.gmra.mrb[18].mxu0 %v237_v34  ;;  %499 = vmatmul.mubr.f32.gmra.mrb[18].mxu1 %v257_v35 }
 0x13a   :  { %v1563_v36 = vpop.f32.mrb[0].mxu0  ;;  %v1565_v37 = vpop.f32.mrb[0].mxu1 }
 0x13b   :  { %v1567_v38 = vpop.f32.mrb[1].mxu0  ;;  %v1569_v39 = vpop.f32.mrb[1].mxu1 }
 0x13c   :  { %v506_v40 = vsel %vm505_vm1, %v1567_v38, 0.0  ;;  %v546_v41 = vsel %vm505_vm1, %v1569_v39, 0.0 }
 0x13d   :  { %v507_v42 = vadd.f32 %v506_v40, %v1563_v36  ;;  %v547_v43 = vadd.f32 %v546_v41, %v1565_v37 }
 0x13e   :  { %v1577_v44 = vpop.f32.mrb[2].mxu1  ;;  %v1579_v45 = vpop.f32.mrb[2].mxu0 }
 0x13f   :  { %v1581_v46 = vpop.f32.mrb[3].mxu1  ;;  %508 = vadd.xlane.f32.xlu0 %v507_v42  ;;  %v1583_v47 = vpop.f32.mrb[3].mxu0 }
 0x140   :  { %v550_v48 = vsel %vm505_vm1, %v1581_v46, 0.0  ;;  %v510_v49 = vsel %vm505_vm1, %v1583_v47, 0.0 }
 0x141   :  { %v551_v50 = vadd.f32 %v550_v48, %v1577_v44  ;;  %v511_v51 = vadd.f32 %v510_v49, %v1579_v45 }
 0x142   :  { %v1591_v52 = vpop.f32.mrb[4].mxu0  ;;  %v1593_v53 = vpop.f32.mrb[4].mxu1 }
 0x143   :  { %552 = vadd.xlane.f32.xlu1 %v551_v50  ;;  %548 = vadd.xlane.f32.xlu0 %v547_v43  ;;  %v1595_v54 = vpop.f32.mrb[5].mxu0  ;;  %v1597_v55 = vpop.f32.mrb[5].mxu1 }
 0x144   :  { %v514_v57 = vsel %vm505_vm1, %v1595_v54, 0.0  ;;  %v554_v60 = vsel %vm505_vm1, %v1597_v55, 0.0 }
 0x145   :  { %v515_v61 = vadd.f32 %v514_v57, %v1591_v52  ;;  %v555_v62 = vadd.f32 %v554_v60, %v1593_v53 }
 0x146   :  { %v1605_v63 = vpop.f32.mrb[6].mxu0  ;;  %v1607_v2 = vpop.f32.mrb[6].mxu1 }
 0x147   :  { %512 = vadd.xlane.f32.xlu0 %v511_v51  ;;  %516 = vadd.xlane.f32.xlu1 %v515_v61  ;;  %v1609_v3 = vpop.f32.mrb[7].mxu0  ;;  %v1611_v4 = vpop.f32.mrb[7].mxu1 }
 0x148   :  { %v518_v5 = vsel %vm505_vm1, %v1609_v3, 0.0  ;;  %v558_v6 = vsel %vm505_vm1, %v1611_v4, 0.0 }
 0x149   :  { %v519_v7 = vadd.f32 %v518_v5, %v1605_v63  ;;  %v559_v8 = vadd.f32 %v558_v6, %v1607_v2 }
 0x14a   :  { %v1619_v9 = vpop.f32.mrb[8].mxu0  ;;  %v1621_v10 = vpop.f32.mrb[8].mxu1 }
 0x14b   :  { %556 = vadd.xlane.f32.xlu0 %v555_v62  ;;  %520 = vadd.xlane.f32.xlu1 %v519_v7  ;;  %v1623_v11 = vpop.f32.mrb[9].mxu0  ;;  %v1625_v12 = vpop.f32.mrb[9].mxu1 }
 0x14c   :  { %v522_v13 = vsel %vm505_vm1, %v1623_v11, 0.0  ;;  %v562_v14 = vsel %vm505_vm1, %v1625_v12, 0.0 }
 0x14d   :  { %v523_v15 = vadd.f32 %v522_v13, %v1619_v9  ;;  %v563_v16 = vadd.f32 %v562_v14, %v1621_v10 }
 0x14e   :  { %v1633_v17 = vpop.f32.mrb[10].mxu0  ;;  %v1635_v18 = vpop.f32.mrb[10].mxu1 }
 0x14f   :  { %560 = vadd.xlane.f32.xlu1 %v559_v8  ;;  %524 = vadd.xlane.f32.xlu0 %v523_v15  ;;  %v1637_v19 = vpop.f32.mrb[11].mxu0  ;;  %v1639_v20 = vpop.f32.mrb[11].mxu1 }
 0x150   :  { %v526_v21 = vsel %vm505_vm1, %v1637_v19, 0.0  ;;  %v566_v22 = vsel %vm505_vm1, %v1639_v20, 0.0 }
 0x151   :  { %v527_v23 = vadd.f32 %v526_v21, %v1633_v17  ;;  %v567_v24 = vadd.f32 %v566_v22, %v1635_v18  ;;  %v1706_v22 = vld [vmem:[%s2171_s3 + $0x28] sm:$0xff] }
 0x152   :  { %v1647_v25 = vpop.f32.mrb[12].mxu0  ;;  %v1649_v26 = vpop.f32.mrb[12].mxu1 }
 0x153   :  { %564 = vadd.xlane.f32.xlu0 %v563_v16  ;;  %528 = vadd.xlane.f32.xlu1 %v527_v23  ;;  %v1651_v27 = vpop.f32.mrb[13].mxu0  ;;  %v1653_v28 = vpop.f32.mrb[13].mxu1  ;;  %v1712_v23 = vld [vmem:[%s2171_s3 + $0x20] sm:$0xff] }
 0x154   :  { %v530_v29 = vsel %vm505_vm1, %v1651_v27, 0.0  ;;  %v570_v30 = vsel %vm505_vm1, %v1653_v28, 0.0 }
 0x155   :  { %v531_v31 = vadd.f32 %v530_v29, %v1647_v25  ;;  %v571_v32 = vadd.f32 %v570_v30, %v1649_v26  ;;  %v1719_v30 = vpop.permute.xlu0 %1013 }
 0x156   :  { %v1661_v33 = vpop.f32.mrb[14].mxu0  ;;  %v1663_v34 = vpop.f32.mrb[14].mxu1 }
 0x157   :  { %568 = vadd.xlane.f32.xlu1 %v567_v24  ;;  %532 = vadd.xlane.f32.xlu0 %v531_v31  ;;  %v1665_v35 = vpop.f32.mrb[15].mxu0  ;;  %v1667_v40 = vpop.f32.mrb[15].mxu1 }
 0x158   :  { %v534_v41 = vsel %vm505_vm1, %v1665_v35, 0.0  ;;  %v574_v42 = vsel %vm505_vm1, %v1667_v40, 0.0  ;;  %v1715_v24 = vpop.permute.xlu1 %1008 }
 0x159   :  { %v535_v43 = vadd.f32 %v534_v41, %v1661_v33  ;;  %v575_v48 = vadd.f32 %v574_v42, %v1663_v34 }
 0x15a   :  { %v1675_v49 = vpop.f32.mrb[16].mxu0  ;;  %v1677_v50 = vpop.f32.mrb[16].mxu1 }
 0x15b   :  { %572 = vadd.xlane.f32.xlu0 %v571_v32  ;;  %536 = vadd.xlane.f32.xlu1 %v535_v43  ;;  %v1679_v51 = vpop.f32.mrb[17].mxu0  ;;  %v1681_v57 = vpop.f32.mrb[17].mxu1 }
 0x15c   :  { %v538_v60 = vsel %vm505_vm1, %v1679_v51, 0.0  ;;  %v578_v61 = vsel %vm505_vm1, %v1681_v57, 0.0  ;;  %v1717_v29 = vpop.permute.xlu1 %1018 }
 0x15d   :  { %v539_v62 = vadd.f32 %v538_v60, %v1675_v49  ;;  %v579_v5 = vadd.f32 %v578_v61, %v1677_v50  ;;  %2193 = vst [vmem:[#allocation12_spill] sm:$0xff] %v1717_v29 }
 0x15e   :  { %v1689_v6 = vpop.f32.mrb[18].mxu0  ;;  %v1691_v7 = vpop.f32.mrb[18].mxu1 }
 0x15f   :  { %576 = vadd.xlane.f32.xlu1 %v575_v48  ;;  %540 = vadd.xlane.f32.xlu0 %v539_v62  ;;  %v1693_v8 = vpop.f32.mrb[19].mxu0  ;;  %v1695_v13 = vpop.f32.mrb[19].mxu1 }
 0x160   :  { %v542_v14 = vsel %vm505_vm1, %v1693_v8, 0.0  ;;  %v582_v15 = vsel %vm505_vm1, %v1695_v13, 0.0  ;;  %v1721_v31 = vpop.permute.xlu1 %1023 }
 0x161   :  { %v543_v16 = vadd.f32 %v542_v14, %v1689_v6  ;;  %v583_v21 = vadd.f32 %v582_v15, %v1691_v7  ;;  %2194 = vst [vmem:[#allocation13_spill] sm:$0xff] %v1721_v31 }
 0x163   :  { %580 = vadd.xlane.f32.xlu0 %v579_v5 }
 0x170   :  { %1033 = vperm.xlu1 %1292, %v1706_v22  }
 0x179   :  { %1028 = vperm.xlu0 %1293, %v1712_v23  }
 0x194   :  { %544 = vadd.xlane.f32.xlu1 %v543_v16 }
 0x198   :  { %584 = vadd.xlane.f32.xlu1 %v583_v21 }
 0x1cc   :  { %v509_v32 = vpop.xlane.xlu0 %508 }
 0x1cd   :  { %v586_v41 = vmul.f32 0.0051020407, %v509_v32 }
 0x1cf   :  { %v1724_v42 = vsub.f32 %v1563_v36, %v586_v41  ;;  %v1727_v43 = vsub.f32 %v1567_v38, %v586_v41 }
 0x1d0   :  { %v553_v48 = vpop.xlane.xlu1 %552  ;;  %v549_v60 = vpop.xlane.xlu0 %548 }
 0x1d1   :  { %v597_v61 = vmul.f32 0.0051020407, %v553_v48  ;;  %v596_v62 = vmul.f32 0.0051020407, %v549_v60  ;;  %v646_v5 = vmul.f32 %v1724_v42, %v1724_v42  ;;  %v647_v14 = vmul.f32 %v1727_v43, %v1727_v43 }
 0x1d3   :  { %v1734_v15 = vsub.f32 %v1565_v37, %v596_v62  ;;  %v1737_v16 = vsub.f32 %v1569_v39, %v596_v62  ;;  %v1740_v36 = vsub.f32 %v1581_v46, %v597_v61  ;;  %v686_v32 = vsel %vm505_vm1, %v647_v14, 0.0 }
 0x1d4   :  { %v513_v38 = vpop.xlane.xlu0 %512  ;;  %v517_v21 = vpop.xlane.xlu1 %516  ;;  %v687_v60 = vadd.f32 %v686_v32, %v646_v5  ;;  %v1760_v5 = vsub.f32 %v1577_v44, %v597_v61 }
 0x1d5   :  { %2195 = vst [vmem:[#allocation14_spill] sm:$0xff] %v1740_v36  ;;  %v587_v41 = vmul.f32 0.0051020407, %v513_v38  ;;  %v588_v48 = vmul.f32 0.0051020407, %v517_v21  ;;  %v666_v0 = vmul.f32 %v1734_v15, %v1734_v15  ;;  %v667_v37 = vmul.f32 %v1737_v16, %v1737_v16 }
 0x1d6   :  { %688 = vadd.xlane.f32.xlu0 %v687_v60  ;;  %v668_v29 = vmul.f32 %v1760_v5, %v1760_v5 }
 0x1d7   :  { %v1748_v31 = vsub.f32 %v1579_v45, %v587_v41  ;;  %v1751_v39 = vsub.f32 %v1583_v47, %v587_v41  ;;  %v1754_v46 = vsub.f32 %v1591_v52, %v588_v48  ;;  %v1757_v62 = vsub.f32 %v1595_v54, %v588_v48 }
 0x1d8   :  { %v557_v14 = vpop.xlane.xlu0 %556  ;;  %v521_v38 = vpop.xlane.xlu1 %520  ;;  %v726_v21 = vsel %vm505_vm1, %v667_v37, 0.0  ;;  %v669_v45 = vmul.f32 %v1740_v36, %v1740_v36 }
 0x1d9   :  { %2196 = vst [vmem:[#allocation15_spill] sm:$0xff] %v1754_v46  ;;  %2197 = vst [vmem:[#allocation16_spill] sm:$0xff] %v1757_v62  ;;  %v598_v32 = vmul.f32 0.0051020407, %v557_v14  ;;  %v589_v47 = vmul.f32 0.0051020407, %v521_v38  ;;  %v727_v41 = vadd.f32 %v726_v21, %v666_v0  ;;  %v650_v52 = vmul.f32 %v1754_v46, %v1754_v46 }
 0x1da   :  { %v651_v54 = vmul.f32 %v1757_v62, %v1757_v62  ;;  %v648_v44 = vmul.f32 %v1748_v31, %v1748_v31  ;;  %v649_v61 = vmul.f32 %v1751_v39, %v1751_v39  ;;  %v730_v62 = vsel %vm505_vm1, %v669_v45, 0.0 }
 0x1db   :  { %v1774_v48 = vsub.f32 %v1593_v53, %v598_v32  ;;  %v1777_v60 = vsub.f32 %v1597_v55, %v598_v32  ;;  %v1780_v0 = vsub.f32 %v1609_v3, %v589_v47  ;;  %728 = vadd.xlane.f32.xlu0 %v727_v41  ;;  %v1788_v32 = vsub.f32 %v1605_v63, %v589_v47 }
 0x1dc   :  { %v561_v37 = vpop.xlane.xlu1 %560  ;;  %v525_v14 = vpop.xlane.xlu0 %524  ;;  %v694_v38 = vsel %vm505_vm1, %v651_v54, 0.0  ;;  %v690_v21 = vsel %vm505_vm1, %v649_v61, 0.0 }
 0x1dd   :  { %2198 = vst [vmem:[#allocation17_spill] sm:$0xff] %v1780_v0  ;;  %v599_v53 = vmul.f32 0.0051020407, %v561_v37  ;;  %v590_v46 = vmul.f32 0.0051020407, %v525_v14  ;;  %v695_v36 = vadd.f32 %v694_v38, %v650_v52  ;;  %v691_v55 = vadd.f32 %v690_v21, %v648_v44 }
 0x1de   :  { %v670_v3 = vmul.f32 %v1774_v48, %v1774_v48  ;;  %v671_v41 = vmul.f32 %v1777_v60, %v1777_v60  ;;  %v653_v54 = vmul.f32 %v1780_v0, %v1780_v0  ;;  %v731_v37 = vadd.f32 %v730_v62, %v668_v29 }
 0x1df   :  { %v1797_v61 = vsub.f32 %v1611_v4, %v599_v53  ;;  %v1800_v45 = vsub.f32 %v1619_v9, %v590_v46  ;;  %v1803_v52 = vsub.f32 %v1623_v11, %v590_v46  ;;  %696 = vadd.xlane.f32.xlu0 %v695_v36  ;;  %692 = vadd.xlane.f32.xlu1 %v691_v55 }
 0x1e0   :  { %v565_v63 = vpop.xlane.xlu0 %564  ;;  %v529_v47 = vpop.xlane.xlu1 %528  ;;  %v734_v44 = vsel %vm505_vm1, %v671_v41, 0.0  ;;  %v1809_v0 = vsub.f32 %v1607_v2, %v599_v53  ;;  %v652_v11 = vmul.f32 %v1788_v32, %v1788_v32  ;;  %v698_v36 = vsel %vm505_vm1, %v653_v54, 0.0 }
 0x1e1   :  { %v600_v14 = vmul.f32 0.0051020407, %v565_v63  ;;  %v591_v38 = vmul.f32 0.0051020407, %v529_v47  ;;  %v735_v21 = vadd.f32 %v734_v44, %v670_v3  ;;  %v654_v4 = vmul.f32 %v1800_v45, %v1800_v45 }
 0x1e2   :  { %v655_v9 = vmul.f32 %v1803_v52, %v1803_v52  ;;  %v673_v2 = vmul.f32 %v1797_v61, %v1797_v61  ;;  %v672_v44 = vmul.f32 %v1809_v0, %v1809_v0 }
 0x1e3   :  { %v1817_v46 = vsub.f32 %v1621_v10, %v600_v14  ;;  %v1820_v29 = vsub.f32 %v1625_v12, %v600_v14  ;;  %v1823_v62 = vsub.f32 %v1637_v19, %v591_v38  ;;  %736 = vadd.xlane.f32.xlu0 %v735_v21  ;;  %v1828_v53 = vsub.f32 %v1633_v17, %v591_v38 }
 0x1e4   :  { %732 = vadd.xlane.f32.xlu1 %v731_v37  ;;  %v569_v55 = vpop.xlane.xlu1 %568  ;;  %v533_v3 = vpop.xlane.xlu0 %532  ;;  %v702_v41 = vsel %vm505_vm1, %v655_v9, 0.0  ;;  %v699_v19 = vadd.f32 %v698_v36, %v652_v11  ;;  %v738_v21 = vsel %vm505_vm1, %v673_v2, 0.0 }
 0x1e5   :  { %v601_v10 = vmul.f32 0.0051020407, %v569_v55  ;;  %v592_v54 = vmul.f32 0.0051020407, %v533_v3  ;;  %v703_v63 = vadd.f32 %v702_v41, %v654_v4  ;;  %v674_v12 = vmul.f32 %v1817_v46, %v1817_v46 }
 0x1e6   :  { %v675_v47 = vmul.f32 %v1820_v29, %v1820_v29  ;;  %v657_v17 = vmul.f32 %v1823_v62, %v1823_v62  ;;  %v656_v36 = vmul.f32 %v1828_v53, %v1828_v53  ;;  %v739_v2 = vadd.f32 %v738_v21, %v672_v44 }
 0x1e7   :  { %v1840_v37 = vsub.f32 %v1639_v20, %v601_v10  ;;  %v1843_v14 = vsub.f32 %v1647_v25, %v592_v54  ;;  %v1846_v38 = vsub.f32 %v1651_v27, %v592_v54  ;;  %704 = vadd.xlane.f32.xlu0 %v703_v63  ;;  %v1856_v41 = vsub.f32 %v1635_v18, %v601_v10 }
 0x1e8   :  { %700 = vadd.xlane.f32.xlu1 %v699_v19  ;;  %v573_v4 = vpop.xlane.xlu0 %572  ;;  %v537_v9 = vpop.xlane.xlu1 %536  ;;  %v742_v11 = vsel %vm505_vm1, %v675_v47, 0.0  ;;  %v706_v20 = vsel %vm505_vm1, %v657_v17, 0.0 }
 0x1e9   :  { %v602_v55 = vmul.f32 0.0051020407, %v573_v4  ;;  %v593_v3 = vmul.f32 0.0051020407, %v537_v9  ;;  %v743_v25 = vadd.f32 %v742_v11, %v674_v12  ;;  %v658_v27 = vmul.f32 %v1843_v14, %v1843_v14 }
 0x1ea   :  { %v659_v54 = vmul.f32 %v1846_v38, %v1846_v38  ;;  %v677_v12 = vmul.f32 %v1840_v37, %v1840_v37  ;;  %v707_v17 = vadd.f32 %v706_v20, %v656_v36  ;;  %v676_v11 = vmul.f32 %v1856_v41, %v1856_v41 }
 0x1eb   :  { %v1861_v63 = vsub.f32 %v1649_v26, %v602_v55  ;;  %v1864_v19 = vsub.f32 %v1653_v28, %v602_v55  ;;  %v1867_v47 = vsub.f32 %v1665_v35, %v593_v3  ;;  %744 = vadd.xlane.f32.xlu0 %v743_v25  ;;  %v1875_v9 = vsub.f32 %v1661_v33, %v593_v3 }
 0x1ec   :  { %740 = vadd.xlane.f32.xlu1 %v739_v2  ;;  %v577_v18 = vpop.xlane.xlu1 %576  ;;  %v541_v10 = vpop.xlane.xlu0 %540  ;;  %v710_v44 = vsel %vm505_vm1, %v659_v54, 0.0  ;;  %v746_v33 = vsel %vm505_vm1, %v677_v12, 0.0 }
 0x1ed   :  { %2199 = vst [vmem:[#allocation18_spill] sm:$0xff] %v1861_v63  ;;  %2200 = vst [vmem:[#allocation19_spill] sm:$0xff] %v1864_v19  ;;  %v603_v21 = vmul.f32 0.0051020407, %v577_v18  ;;  %v594_v4 = vmul.f32 0.0051020407, %v541_v10  ;;  %v711_v26 = vadd.f32 %v710_v44, %v658_v27  ;;  %v678_v28 = vmul.f32 %v1861_v63, %v1861_v63 }
 0x1ee   :  { %2201 = vst [vmem:[#allocation20_spill] sm:$0xff] %v1867_v47  ;;  %2202 = vst [vmem:[#allocation21_spill] sm:$0xff] %v1875_v9  ;;  %v679_v35 = vmul.f32 %v1864_v19, %v1864_v19  ;;  %v661_v55 = vmul.f32 %v1867_v47, %v1867_v47  ;;  %v660_v10 = vmul.f32 %v1875_v9, %v1875_v9 }
 0x1ef   :  { %v1884_v36 = vsub.f32 %v1667_v40, %v603_v21  ;;  %v1887_v20 = vsub.f32 %v1675_v49, %v594_v4  ;;  %v1890_v25 = vsub.f32 %v1679_v51, %v594_v4  ;;  %712 = vadd.xlane.f32.xlu0 %v711_v26  ;;  %v1899_v49 = vsub.f32 %v1663_v34, %v603_v21 }
 0x1f0   :  { %708 = vadd.xlane.f32.xlu1 %v707_v17  ;;  %v581_v3 = vpop.xlane.xlu0 %580  ;;  %v750_v27 = vsel %vm505_vm1, %v679_v35, 0.0  ;;  %v747_v51 = vadd.f32 %v746_v33, %v676_v11  ;;  %v714_v12 = vsel %vm505_vm1, %v661_v55, 0.0 }
 0x1f1   :  { %2203 = vst [vmem:[#allocation22_spill] sm:$0xff] %v1887_v20  ;;  %2204 = vst [vmem:[#allocation23_spill] sm:$0xff] %v1890_v25  ;;  %v604_v2 = vmul.f32 0.0051020407, %v581_v3  ;;  %v751_v54 = vadd.f32 %v750_v27, %v678_v28  ;;  %v662_v18 = vmul.f32 %v1887_v20, %v1887_v20  ;;  %v663_v40 = vmul.f32 %v1890_v25, %v1890_v25  ;;  %v1924_v3 = vld [vmem:[%s2171_s3 + $0x38] sm:$0xff]  ;;  %v1930_v27 = vld [vmem:[%s2171_s3 + $0x48] sm:$0xff] }
 0x1f2   :  { %v681_v26 = vmul.f32 %v1884_v36, %v1884_v36  ;;  %v715_v35 = vadd.f32 %v714_v12, %v660_v10  ;;  %v1966_v10 = vld [vmem:[%s2171_s3 + $0x78] sm:$0xff]  ;;  %v1971_v12 = vld [vmem:[%s2171_s3 + $0x60] sm:$0xff] }
 0x1f3   :  { %v1905_v44 = vsub.f32 %v1677_v50, %v604_v2  ;;  %v1908_v17 = vsub.f32 %v1681_v57, %v604_v2  ;;  %752 = vadd.xlane.f32.xlu0 %v751_v54  ;;  %v718_v4 = vsel %vm505_vm1, %v663_v40, 0.0  ;;  %v680_v50 = vmul.f32 %v1899_v49, %v1899_v49  ;;  %v1935_v2 = vld [vmem:[%s2171_s3 + $0x30] sm:$0xff]  ;;  %v1942_v54 = vld [vmem:[%s2171_s3 + $0x58] sm:$0xff]  ;;  %v1954_v40 = vld [vmem:[%s2171_s3 + $0x68] sm:$0xff] }
 0x1f4   :  { %748 = vadd.xlane.f32.xlu1 %v747_v51  ;;  %v719_v34 = vadd.f32 %v718_v4, %v662_v18  ;;  %v754_v11 = vsel %vm505_vm1, %v681_v26, 0.0  ;;  %v1947_v18 = vld [vmem:[%s2171_s3 + $0x40] sm:$0xff]  ;;  %v1959_v51 = vld [vmem:[%s2171_s3 + $0x50] sm:$0xff] }
 0x1f5   :  { %2205 = vst [vmem:[#allocation24_spill] sm:$0xff] %v1905_v44  ;;  %2206 = vst [vmem:[#allocation25_spill] sm:$0xff] %v1908_v17  ;;  %v682_v21 = vmul.f32 %v1905_v44, %v1905_v44  ;;  %v683_v28 = vmul.f32 %v1908_v17, %v1908_v17  ;;  %v755_v33 = vadd.f32 %v754_v11, %v680_v50  ;;  %v1978_v4 = vld [vmem:[%s2171_s3 + $0x70] sm:$0xff]  ;;  %v1984_v26 = vld [vmem:[%s2171_s3 + $0x80] sm:$0xff] }
 0x1f7   :  { %720 = vadd.xlane.f32.xlu0 %v719_v34  ;;  %v758_v57 = vsel %vm505_vm1, %v683_v28, 0.0  ;;  %v1987_v34 = vpop.permute.xlu1 %1033 }
 0x1f8   :  { %716 = vadd.xlane.f32.xlu1 %v715_v35  ;;  %v759_v55 = vadd.f32 %v758_v57, %v682_v21  ;;  %v1438_v21 = vmov 0  }
 0x1fb   :  { %760 = vadd.xlane.f32.xlu0 %v759_v55 }
 0x1fc   :  { %756 = vadd.xlane.f32.xlu1 %v755_v33 }
 0x20d   :  { %1043 = vperm.xlu1 %1292, %v1924_v3  }
 0x211   :  { %1053 = vperm.xlu1 %1292, %v1930_v27   ;;  %1038 = vperm.xlu0 %1293, %v1935_v2  }
 0x215   :  { %1063 = vperm.xlu1 %1292, %v1942_v54   ;;  %1048 = vperm.xlu0 %1293, %v1947_v18  }
 0x219   :  { %1073 = vperm.xlu1 %1292, %v1954_v40   ;;  %1058 = vperm.xlu0 %1293, %v1959_v51  }
 0x21d   :  { %1083 = vperm.xlu1 %1292, %v1966_v10   ;;  %1068 = vperm.xlu0 %1293, %v1971_v12  }
 0x221   :  { %1078 = vperm.xlu0 %1293, %v1978_v4   ;;  %v545_v28 = vpop.xlane.xlu1 %544 }
 0x222   :  { %v595_v35 = vmul.f32 0.0051020407, %v545_v28 }
 0x224   :  { %v1990_v57 = vsub.f32 %v1693_v8, %v595_v35  ;;  %v1993_v55 = vsub.f32 %v1689_v6, %v595_v35 }
 0x225   :  { %1088 = vperm.xlu0 %1293, %v1984_v26   ;;  %v585_v50 = vpop.xlane.xlu1 %584 }
 0x226   :  { %2207 = vst [vmem:[#allocation26_spill] sm:$0xff] %v1990_v57  ;;  %v605_v11 = vmul.f32 0.0051020407, %v585_v50  ;;  %2208 = vst [vmem:[#allocation27_spill] sm:$0xff] %v1993_v55  ;;  %v665_v17 = vmul.f32 %v1990_v57, %v1990_v57  ;;  %v664_v28 = vmul.f32 %v1993_v55, %v1993_v55 }
 0x228   :  { %v1996_v33 = vsub.f32 %v1695_v13, %v605_v11  ;;  %v2001_v44 = vsub.f32 %v1691_v7, %v605_v11  ;;  %v722_v25 = vsel %vm505_vm1, %v665_v17, 0.0  ;;  %v2014_v7 = vld [vmem:[%s2171_s3 + $0x88] sm:$0xff]  ;;  %v2017_v17 = vpop.permute.xlu0 %1028 }
 0x229   :  { %1294 = vset.pattern.permute.xlu0 %v1438_v21  ;;  %v723_v50 = vadd.f32 %v722_v25, %v664_v28 }
 0x22a   :  { %2209 = vst [vmem:[#allocation28_spill] sm:$0xff] %v1996_v33  ;;  %2210 = vst [vmem:[#allocation29_spill] sm:$0xff] %v2001_v44  ;;  %v685_v8 = vmul.f32 %v1996_v33, %v1996_v33  ;;  %v684_v6 = vmul.f32 %v2001_v44, %v2001_v44 }
 0x22c   :  { %v762_v13 = vsel %vm505_vm1, %v685_v8, 0.0 }
 0x22d   :  { %v763_v35 = vadd.f32 %v762_v13, %v684_v6 }
 0x241   :  { %724 = vadd.xlane.f32.xlu1 %v723_v50 }
 0x245   :  { %764 = vadd.xlane.f32.xlu1 %v763_v35 }
 0x256   :  { %1093 = vperm.xlu1 %1292, %v2014_v7  }
 0x25a   :  { %1295 = vset.pattern.permute.xlu1 %v1438_v21 }
 0x263   :  { %v689_v11 = vpop.xlane.xlu0 %688 }
 0x264   :  { %v766_v25 = vmul.f32 0.0051020407, %v689_v11 }
 0x266   :  { %v806_v28 = vadd.f32 1e-05, %v766_v25 }
 0x268   :  { %v729_v33 = vpop.xlane.xlu0 %728  ;;  %1298 = vrsqrt.f32 %v806_v28 }
 0x269   :  { %v776_v44 = vmul.f32 0.0051020407, %v729_v33 }
 0x26b   :  { %v816_v8 = vadd.f32 1e-05, %v776_v44 }
 0x26c   :  { %v697_v50 = vpop.xlane.xlu0 %696  ;;  %v693_v13 = vpop.xlane.xlu1 %692 }
 0x26d   :  { %1300 = vrsqrt.f32 %v816_v8  ;;  %v768_v6 = vmul.f32 0.0051020407, %v697_v50  ;;  %v767_v35 = vmul.f32 0.0051020407, %v693_v13 }
 0x26f   :  { %v808_v57 = vadd.f32 1e-05, %v768_v6  ;;  %v807_v55 = vadd.f32 1e-05, %v767_v35 }
 0x270   :  { %v737_v20 = vpop.xlane.xlu0 %736 }
 0x271   :  { %v778_v47 = vmul.f32 0.0051020407, %v737_v20  ;;  %v733_v9 = vpop.xlane.xlu1 %732  ;;  %1302 = vrsqrt.f32 %v807_v55 }
 0x272   :  { %v777_v21 = vmul.f32 0.0051020407, %v733_v9  ;;  %v1299_v19 = vpop.eup %1298  ;;  %1304 = vrsqrt.f32 %v808_v57 }
 0x273   :  { %v818_v11 = vadd.f32 1e-05, %v778_v47  ;;  %v846_v33 = vmul.f32 %v1299_v19, %v1524_v56 }
 0x274   :  { %v817_v25 = vadd.f32 1e-05, %v777_v21  ;;  %v705_v63 = vpop.xlane.xlu0 %704 }
 0x275   :  { %v701_v44 = vpop.xlane.xlu1 %700  ;;  %868 = vperm.xlu0 %1294, %v846_v33   ;;  %v770_v50 = vmul.f32 0.0051020407, %v705_v63 }
 0x276   :  { %1306 = vrsqrt.f32 %v817_v25  ;;  %v769_v28 = vmul.f32 0.0051020407, %v701_v44 }
 0x277   :  { %v1301_v8 = vpop.eup %1300  ;;  %1308 = vrsqrt.f32 %v818_v11  ;;  %v810_v47 = vadd.f32 1e-05, %v770_v50 }
 0x278   :  { %v809_v6 = vadd.f32 1e-05, %v769_v28  ;;  %v856_v20 = vmul.f32 %v1301_v8, %v1959_v51  ;;  %v745_v13 = vpop.xlane.xlu0 %744 }
 0x279   :  { %v741_v55 = vpop.xlane.xlu1 %740  ;;  %v780_v35 = vmul.f32 0.0051020407, %v745_v13 }
 0x27a   :  { %v779_v9 = vmul.f32 0.0051020407, %v741_v55  ;;  %918 = vperm.xlu1 %1295, %v856_v20   ;;  %1310 = vrsqrt.f32 %v809_v6 }
 0x27b   :  { %v1303_v57 = vpop.eup %1302  ;;  %v820_v11 = vadd.f32 1e-05, %v780_v35 }
 0x27c   :  { %v819_v21 = vadd.f32 1e-05, %v779_v9  ;;  %v847_v19 = vmul.f32 %v1303_v57, %v1529_v58  ;;  %v1305_v25 = vpop.eup %1304  ;;  %v713_v33 = vpop.xlane.xlu0 %712 }
 0x27d   :  { %v709_v56 = vpop.xlane.xlu1 %708  ;;  %v848_v28 = vmul.f32 %v1305_v25, %v1536_v59  ;;  %v772_v20 = vmul.f32 0.0051020407, %v713_v33 }
 0x27e   :  { %1312 = vrsqrt.f32 %v819_v21  ;;  %873 = vperm.xlu1 %1295, %v847_v19   ;;  %v771_v51 = vmul.f32 0.0051020407, %v709_v56 }
 0x27f   :  { %1314 = vrsqrt.f32 %v810_v47  ;;  %v812_v21 = vadd.f32 1e-05, %v772_v20 }
 0x280   :  { %v1307_v63 = vpop.eup %1306  ;;  %1316 = vrsqrt.f32 %v820_v11  ;;  %v811_v58 = vadd.f32 1e-05, %v771_v51  ;;  %v753_v55 = vpop.xlane.xlu0 %752 }
 0x281   :  { %v749_v44 = vpop.xlane.xlu1 %748  ;;  %v857_v8 = vmul.f32 %v1307_v63, %v1942_v54  ;;  %v1309_v50 = vpop.eup %1308  ;;  %v782_v59 = vmul.f32 0.0051020407, %v753_v55 }
 0x282   :  { %v781_v6 = vmul.f32 0.0051020407, %v749_v44  ;;  %878 = vperm.xlu1 %1295, %v848_v28   ;;  %v858_v57 = vmul.f32 %v1309_v50, %v1971_v12 }
 0x283   :  { %923 = vperm.xlu0 %1294, %v857_v8   ;;  %v822_v11 = vadd.f32 1e-05, %v782_v59 }
 0x284   :  { %v821_v13 = vadd.f32 1e-05, %v781_v6  ;;  %v1311_v47 = vpop.eup %1310  ;;  %v721_v63 = vpop.xlane.xlu0 %720 }
 0x285   :  { %v717_v9 = vpop.xlane.xlu1 %716  ;;  %v849_v56 = vmul.f32 %v1311_v47, %v1542_v1  ;;  %v774_v50 = vmul.f32 0.0051020407, %v721_v63 }
 0x286   :  { %1318 = vrsqrt.f32 %v821_v13  ;;  %928 = vperm.xlu1 %1295, %v858_v57   ;;  %v773_v12 = vmul.f32 0.0051020407, %v717_v9 }
 0x287   :  { %1320 = vrsqrt.f32 %v811_v58  ;;  %v814_v13 = vadd.f32 1e-05, %v774_v50 }
 0x288   :  { %v1313_v35 = vpop.eup %1312  ;;  %1322 = vrsqrt.f32 %v812_v21  ;;  %v813_v1 = vadd.f32 1e-05, %v773_v12  ;;  %v761_v6 = vpop.xlane.xlu0 %760 }
 0x289   :  { %v757_v54 = vpop.xlane.xlu1 %756  ;;  %v859_v19 = vmul.f32 %v1313_v35, %v1954_v40  ;;  %v1315_v25 = vpop.eup %1314  ;;  %v784_v55 = vmul.f32 0.0051020407, %v761_v6 }
 0x28a   :  { %v783_v33 = vmul.f32 0.0051020407, %v757_v54  ;;  %883 = vperm.xlu1 %1295, %v849_v56   ;;  %v850_v44 = vmul.f32 %v1315_v25, %v1712_v23  ;;  %v1317_v28 = vpop.eup %1316  ;;  %v2211_v25 = vmov 1  }
 0x28b   :  { %933 = vperm.xlu0 %1294, %v859_v19   ;;  %v860_v40 = vmul.f32 %v1317_v28, %v1978_v4  ;;  %v824_v47 = vadd.f32 1e-05, %v784_v55 }
 0x28c   :  { %v823_v51 = vadd.f32 1e-05, %v783_v33 }
 0x28e   :  { %1324 = vrsqrt.f32 %v823_v51  ;;  %888 = vperm.xlu1 %1295, %v850_v44  }
 0x28f   :  { %1326 = vrsqrt.f32 %v822_v11 }
 0x290   :  { %v1319_v8 = vpop.eup %1318  ;;  %1328 = vrsqrt.f32 %v813_v1 }
 0x291   :  { %v861_v20 = vmul.f32 %v1319_v8, %v1966_v10  ;;  %v1321_v58 = vpop.eup %1320  ;;  %1330 = vrsqrt.f32 %v814_v13  ;;  %v2051_v8 = vpop.permute.xlu0 %1038 }
 0x292   :  { %938 = vperm.xlu1 %1295, %v860_v40   ;;  %v851_v23 = vmul.f32 %v1321_v58, %v1706_v22  ;;  %v1323_v9 = vpop.eup %1322  ;;  %1332 = vrsqrt.f32 %v824_v47 }
 0x293   :  { %943 = vperm.xlu0 %1294, %v861_v20   ;;  %v852_v35 = vmul.f32 %v1323_v9, %v1935_v2  ;;  %v804_v2 = vld [vmem:[%s2171_s3 + $0x90] sm:$0xff] }
 0x295   :  { %v2053_v6 = vpop.permute.xlu0 %1048 }
 0x296   :  { %893 = vperm.xlu1 %1295, %v851_v23  }
 0x298   :  { %v1325_v57 = vpop.eup %1324 }
 0x299   :  { %v863_v21 = vmul.f32 %v1325_v57, %v2014_v7  ;;  %v1327_v4 = vpop.eup %1326  ;;  %v1059_v58 = vpop.permute.xlu0 %1058 }
 0x29a   :  { %898 = vperm.xlu1 %1295, %v852_v35   ;;  %v862_v10 = vmul.f32 %v1327_v4, %v1984_v26  ;;  %v1329_v59 = vpop.eup %1328  ;;  %v805_v26 = vld [vmem:[%s2171_s3 + $0x98] sm:$0xff]  ;;  %s1439_s3 = smov [#allocation8]  }
 0x29b   :  { %953 = vperm.xlu0 %1294, %v863_v21   ;;  %v853_v54 = vmul.f32 %v1329_v59, %v1924_v3  ;;  %v1331_v22 = vpop.eup %1330  ;;  %v2043_v3 = vpop.permute.xlu1 %1043  ;;  %s1191_s1 = sshll.u32 %s1439_s3, 4  ;;  %s1192_s1 = int_to_ptr.vmem [resolvable:$true] %s1191_s1 }
 0x29c   :  { %v854_v56 = vmul.f32 %v1331_v22, %v1947_v18  ;;  %v1333_v19 = vpop.eup %1332  ;;  %s1404_s13 = scalar_lea.vmem %s1192_s1, 5120  ;;  %p1409_p11 = scmp.lt.s32.totalorder %s1192_s1, %s1192_s1 }
 0x29d   :  { %v864_v7 = vmul.f32 %v1333_v19, %v804_v2  ;;  %v1069_v23 = vpop.permute.xlu0 %1068  ;;  %p1405_p10 = scmp.ne.s32.totalorder %s1192_s1, %s1404_s13  ;;  %p1410_p12 = scmp.lt.s32.totalorder %s1404_s13, %s1404_s13 }
 0x29e   :  { %948 = vperm.xlu1 %1295, %v862_v10  }
 0x29f   :  { %v2045_v33 = vpop.permute.xlu1 %1053  ;;  %p1411_p13 = por %p1410_p12, %p1409_p11 }
 0x2a1   :  { %v2057_v9 = vpop.permute.xlu0 %1078  ;;  %p1412_p0 = pnand %p1411_p13, %p1405_p10 }
 0x2a2   :  { %903 = vperm.xlu1 %1295, %v853_v54  }
 0x2a3   :  { %v1064_v18 = vpop.permute.xlu1 %1063 }
 0x2a5   :  { %v2059_v57 = vpop.permute.xlu0 %1088 }
 0x2a6   :  { %908 = vperm.xlu1 %1295, %v854_v56  }
 0x2a7   :  { %v2047_v63 = vpop.permute.xlu1 %1073 }
 0x2aa   :  { %958 = vperm.xlu1 %1295, %v864_v7  }
 0x2ab   :  { %v2049_v11 = vpop.permute.xlu1 %1083 }
 0x2ae   :  { %1297 = vset.pattern.permute.xlu1 %v2211_v25 }
 0x2af   :  { %1103 = vperm.xlu1 %1297, %v805_v26  }
 0x2ce   :  { %v725_v12 = vpop.xlane.xlu1 %724 }
 0x2cf   :  { %v775_v51 = vmul.f32 0.0051020407, %v725_v12 }
 0x2d1   :  { %v815_v44 = vadd.f32 1e-05, %v775_v51  ;;  %v2213_v51 = vld [vmem:[#allocation15_spill] sm:$0xff] }
 0x2d2   :  { %v765_v28 = vpop.xlane.xlu1 %764 }
 0x2d3   :  { %1334 = vrsqrt.f32 %v815_v44  ;;  %v785_v50 = vmul.f32 0.0051020407, %v765_v28  ;;  %v2214_v28 = vld [vmem:[#allocation16_spill] sm:$0xff] }
 0x2d5   :  { %v825_v1 = vadd.f32 1e-05, %v785_v50 }
 0x2d6   :  { %v2061_v47 = vpop.permute.xlu1 %1093 }
 0x2d7   :  { %1336 = vrsqrt.f32 %v825_v1 }
 0x2dd   :  { %v1335_v40 = vpop.eup %1334 }
 0x2de   :  { %v855_v20 = vmul.f32 %v1335_v40, %v1930_v27 }
 0x2e0   :  { %913 = vperm.xlu0 %1294, %v855_v20  }
 0x2e1   :  { %v1337_v13 = vpop.eup %1336 }
 0x2e2   :  { %v865_v55 = vmul.f32 %v1337_v13, %v805_v26 }
 0x2e4   :  { %963 = vperm.xlu0 %1294, %v865_v55  }
 0x2e8   :  { %1296 = vset.pattern.permute.xlu0 %v2211_v25 }
 0x2e9   :  { %1098 = vperm.xlu0 %1296, %v804_v2  }
 0x2f4   :  { %v869_v35 = vpop.permute.xlu0 %868 }
 0x2f5   :  { %v966_v21 = vmul.f32 %v869_v35, %v1724_v42  ;;  %v967_v27 = vmul.f32 %v869_v35, %v1727_v43 }
 0x2f7   :  { %v1106_v4 = vadd.f32 %v1715_v24, %v966_v21  ;;  %v1107_v10 = vadd.f32 %v1715_v24, %v967_v27 }
 0x2f9   :  { %v919_v59 = vpop.permute.xlu1 %918  ;;  %1146 = vst [vmem:[#allocation8] sm:$0xff] %v1106_v4  ;;  %1147 = vst.msk [vmem:[#allocation8 + $0x8] sm:$0xff] %vm505_vm1, %v1107_v10  ;;  %v2216_v10 = vld [vmem:[#allocation17_spill] sm:$0xff] }
 0x2fa   :  { %v986_v54 = vmul.f32 %v919_v59, %v1734_v15  ;;  %v987_v22 = vmul.f32 %v919_v59, %v1737_v16  ;;  %v2212_v16 = vld [vmem:[#allocation14_spill] sm:$0xff] }
 0x2fc   :  { %v1126_v56 = vadd.f32 %v1059_v58, %v986_v54  ;;  %v1127_v19 = vadd.f32 %v1059_v58, %v987_v22 }
 0x2fd   :  { %v874_v42 = vpop.permute.xlu1 %873 }
 0x2fe   :  { %1166 = vst [vmem:[#allocation8 + $0xa0] sm:$0xff] %v1126_v56  ;;  %1167 = vst.msk [vmem:[#allocation8 + $0xa8] sm:$0xff] %vm505_vm1, %v1127_v19  ;;  %v968_v43 = vmul.f32 %v874_v42, %v1748_v31  ;;  %v969_v2 = vmul.f32 %v874_v42, %v1751_v39  ;;  %v2215_v39 = vld [vmem:[#allocation12_spill] sm:$0xff] }
 0x300   :  { %v1108_v24 = vadd.f32 %v1719_v30, %v968_v43  ;;  %v1109_v7 = vadd.f32 %v1719_v30, %v969_v2 }
 0x301   :  { %v879_v25 = vpop.permute.xlu1 %878 }
 0x302   :  { %v924_v26 = vpop.permute.xlu0 %923  ;;  %1148 = vst [vmem:[#allocation8 + $0x10] sm:$0xff] %v1108_v24  ;;  %1149 = vst.msk [vmem:[#allocation8 + $0x18] sm:$0xff] %vm505_vm1, %v1109_v7  ;;  %v970_v44 = vmul.f32 %v879_v25, %v2213_v51  ;;  %v971_v50 = vmul.f32 %v879_v25, %v2214_v28 }
 0x303   :  { %v988_v15 = vmul.f32 %v924_v26, %v1760_v5  ;;  %v989_v12 = vmul.f32 %v924_v26, %v2212_v16 }
 0x304   :  { %v1110_v40 = vadd.f32 %v2215_v39, %v970_v44  ;;  %v1111_v20 = vadd.f32 %v2215_v39, %v971_v50  ;;  %v2221_v39 = vld [vmem:[#allocation20_spill] sm:$0xff] }
 0x305   :  { %v1128_v31 = vadd.f32 %v1064_v18, %v988_v15  ;;  %v1129_v1 = vadd.f32 %v1064_v18, %v989_v12  ;;  %v929_v30 = vpop.permute.xlu1 %928 }
 0x306   :  { %1150 = vst [vmem:[#allocation8 + $0x20] sm:$0xff] %v1110_v40  ;;  %1151 = vst.msk [vmem:[#allocation8 + $0x28] sm:$0xff] %vm505_vm1, %v1111_v20  ;;  %v990_v5 = vmul.f32 %v929_v30, %v1774_v48  ;;  %v991_v58 = vmul.f32 %v929_v30, %v1777_v60  ;;  %v2217_v60 = vld [vmem:[#allocation13_spill] sm:$0xff] }
 0x307   :  { %1168 = vst [vmem:[#allocation8 + $0xb0] sm:$0xff] %v1128_v31  ;;  %1169 = vst.msk [vmem:[#allocation8 + $0xb8] sm:$0xff] %vm505_vm1, %v1129_v1 }
 0x308   :  { %v1130_v13 = vadd.f32 %v1069_v23, %v990_v5  ;;  %v1131_v55 = vadd.f32 %v1069_v23, %v991_v58  ;;  %v2222_v58 = vld [vmem:[#allocation22_spill] sm:$0xff] }
 0x309   :  { %v884_v21 = vpop.permute.xlu1 %883 }
 0x30a   :  { %v934_v35 = vpop.permute.xlu0 %933  ;;  %1170 = vst [vmem:[#allocation8 + $0xc0] sm:$0xff] %v1130_v13  ;;  %1171 = vst.msk [vmem:[#allocation8 + $0xc8] sm:$0xff] %vm505_vm1, %v1131_v55  ;;  %v972_v4 = vmul.f32 %v884_v21, %v1788_v32  ;;  %v973_v59 = vmul.f32 %v884_v21, %v2216_v10  ;;  %v2223_v55 = vld [vmem:[#allocation23_spill] sm:$0xff] }
 0x30b   :  { %v992_v18 = vmul.f32 %v934_v35, %v1809_v0  ;;  %v993_v27 = vmul.f32 %v934_v35, %v1797_v61 }
 0x30c   :  { %v1112_v22 = vadd.f32 %v2217_v60, %v972_v4  ;;  %v1113_v23 = vadd.f32 %v2217_v60, %v973_v59  ;;  %v2224_v4 = vld [vmem:[#allocation27_spill] sm:$0xff] }
 0x30d   :  { %v1132_v54 = vadd.f32 %v2047_v63, %v992_v18  ;;  %v1133_v48 = vadd.f32 %v2047_v63, %v993_v27  ;;  %v889_v56 = vpop.permute.xlu1 %888 }
 0x30e   :  { %1152 = vst [vmem:[#allocation8 + $0x30] sm:$0xff] %v1112_v22  ;;  %1153 = vst.msk [vmem:[#allocation8 + $0x38] sm:$0xff] %vm505_vm1, %v1113_v23  ;;  %v974_v0 = vmul.f32 %v889_v56, %v1800_v45  ;;  %v975_v32 = vmul.f32 %v889_v56, %v1803_v52  ;;  %v2226_v23 = vld [vmem:[#allocation29_spill] sm:$0xff]  ;;  %v2227_v56 = vld [vmem:[#allocation28_spill] sm:$0xff] }
 0x30f   :  { %1172 = vst [vmem:[#allocation8 + $0xd0] sm:$0xff] %v1132_v54  ;;  %1173 = vst.msk [vmem:[#allocation8 + $0xd8] sm:$0xff] %vm505_vm1, %v1133_v48 }
 0x310   :  { %v1114_v61 = vadd.f32 %v2017_v17, %v974_v0  ;;  %v1115_v19 = vadd.f32 %v2017_v17, %v975_v32 }
 0x311   :  { %v939_v42 = vpop.permute.xlu1 %938 }
 0x312   :  { %v944_v63 = vpop.permute.xlu0 %943  ;;  %1154 = vst [vmem:[#allocation8 + $0x40] sm:$0xff] %v1114_v61  ;;  %1155 = vst.msk [vmem:[#allocation8 + $0x48] sm:$0xff] %vm505_vm1, %v1115_v19  ;;  %v994_v24 = vmul.f32 %v939_v42, %v1817_v46  ;;  %v995_v7 = vmul.f32 %v939_v42, %v1820_v29  ;;  %v2228_v19 = vld [vmem:[#allocation24_spill] sm:$0xff]  ;;  %v2229_v42 = vld [vmem:[#allocation25_spill] sm:$0xff] }
 0x313   :  { %v996_v43 = vmul.f32 %v944_v63, %v1856_v41  ;;  %v997_v2 = vmul.f32 %v944_v63, %v1840_v37 }
 0x314   :  { %v1134_v26 = vadd.f32 %v2057_v9, %v994_v24  ;;  %v1135_v17 = vadd.f32 %v2057_v9, %v995_v7 }
 0x315   :  { %v1136_v45 = vadd.f32 %v2049_v11, %v996_v43  ;;  %v1137_v52 = vadd.f32 %v2049_v11, %v997_v2  ;;  %v894_v25 = vpop.permute.xlu1 %893 }
 0x316   :  { %1174 = vst [vmem:[#allocation8 + $0xe0] sm:$0xff] %v1134_v26  ;;  %1175 = vst.msk [vmem:[#allocation8 + $0xe8] sm:$0xff] %vm505_vm1, %v1135_v17  ;;  %v976_v37 = vmul.f32 %v894_v25, %v1828_v53  ;;  %v977_v46 = vmul.f32 %v894_v25, %v1823_v62 }
 0x317   :  { %1176 = vst [vmem:[#allocation8 + $0xf0] sm:$0xff] %v1136_v45  ;;  %1177 = vst.msk [vmem:[#allocation8 + $0xf8] sm:$0xff] %vm505_vm1, %v1137_v52 }
 0x318   :  { %v1116_v29 = vadd.f32 %v1987_v34, %v976_v37  ;;  %v1117_v41 = vadd.f32 %v1987_v34, %v977_v46 }
 0x319   :  { %v899_v15 = vpop.permute.xlu1 %898 }
 0x31a   :  { %v954_v11 = vpop.permute.xlu0 %953  ;;  %1156 = vst [vmem:[#allocation8 + $0x50] sm:$0xff] %v1116_v29  ;;  %1157 = vst.msk [vmem:[#allocation8 + $0x58] sm:$0xff] %vm505_vm1, %v1117_v41  ;;  %v978_v12 = vmul.f32 %v899_v15, %v1843_v14  ;;  %v979_v51 = vmul.f32 %v899_v15, %v1846_v38  ;;  %v2219_v14 = vld [vmem:[#allocation19_spill] sm:$0xff] }
 0x31b   :  { %v1000_v9 = vmul.f32 %v954_v11, %v1899_v49  ;;  %v1001_v16 = vmul.f32 %v954_v11, %v1884_v36  ;;  %v2218_v36 = vld [vmem:[#allocation18_spill] sm:$0xff] }
 0x31c   :  { %v1118_v44 = vadd.f32 %v2051_v8, %v978_v12  ;;  %v1119_v34 = vadd.f32 %v2051_v8, %v979_v51  ;;  %v2220_v8 = vld [vmem:[#allocation21_spill] sm:$0xff] }
 0x31d   :  { %v1140_v53 = vadd.f32 %v2061_v47, %v1000_v9  ;;  %v1141_v62 = vadd.f32 %v2061_v47, %v1001_v16  ;;  %v949_v28 = vpop.permute.xlu1 %948 }
 0x31e   :  { %1158 = vst [vmem:[#allocation8 + $0x60] sm:$0xff] %v1118_v44  ;;  %1159 = vst.msk [vmem:[#allocation8 + $0x68] sm:$0xff] %vm505_vm1, %v1119_v34  ;;  %v998_v49 = vmul.f32 %v949_v28, %v2218_v36  ;;  %v999_v50 = vmul.f32 %v949_v28, %v2219_v14 }
 0x31f   :  { %1180 = vst [vmem:[#allocation8 + $0x110] sm:$0xff] %v1140_v53  ;;  %1181 = vst.msk [vmem:[#allocation8 + $0x118] sm:$0xff] %vm505_vm1, %v1141_v62 }
 0x320   :  { %v1138_v38 = vadd.f32 %v2059_v57, %v998_v49  ;;  %v1139_v31 = vadd.f32 %v2059_v57, %v999_v50 }
 0x321   :  { %v904_v47 = vpop.permute.xlu1 %903 }
 0x322   :  { %1178 = vst [vmem:[#allocation8 + $0x100] sm:$0xff] %v1138_v38  ;;  %1179 = vst.msk [vmem:[#allocation8 + $0x108] sm:$0xff] %vm505_vm1, %v1139_v31  ;;  %v980_v1 = vmul.f32 %v904_v47, %v2220_v8  ;;  %v981_v40 = vmul.f32 %v904_v47, %v2221_v39 }
 0x324   :  { %v1120_v20 = vadd.f32 %v2043_v3, %v980_v1  ;;  %v1121_v30 = vadd.f32 %v2043_v3, %v981_v40  ;;  %v2225_v3 = vld [vmem:[#allocation26_spill] sm:$0xff] }
 0x325   :  { %v909_v5 = vpop.permute.xlu1 %908 }
 0x326   :  { %1160 = vst [vmem:[#allocation8 + $0x70] sm:$0xff] %v1120_v20  ;;  %1161 = vst.msk [vmem:[#allocation8 + $0x78] sm:$0xff] %vm505_vm1, %v1121_v30  ;;  %v982_v13 = vmul.f32 %v909_v5, %v2222_v58  ;;  %v983_v57 = vmul.f32 %v909_v5, %v2223_v55 }
 0x328   :  { %v1122_v35 = vadd.f32 %v2053_v6, %v982_v13  ;;  %v1123_v21 = vadd.f32 %v2053_v6, %v983_v57 }
 0x329   :  { %v959_v18 = vpop.permute.xlu1 %958 }
 0x32a   :  { %1162 = vst [vmem:[#allocation8 + $0x80] sm:$0xff] %v1122_v35  ;;  %1163 = vst.msk [vmem:[#allocation8 + $0x88] sm:$0xff] %vm505_vm1, %v1123_v21  ;;  %v1002_v63 = vmul.f32 %v959_v18, %v2228_v19  ;;  %v1003_v43 = vmul.f32 %v959_v18, %v2229_v42 }
 0x32e   :  { %v1104_v22 = vpop.permute.xlu1 %1103 }
 0x35f   :  { %v914_v27 = vpop.permute.xlu0 %913 }
 0x360   :  { %v984_v10 = vmul.f32 %v914_v27, %v2224_v4  ;;  %v985_v59 = vmul.f32 %v914_v27, %v2225_v3 }
 0x362   :  { %v1124_v54 = vadd.f32 %v2045_v33, %v984_v10  ;;  %v1125_v48 = vadd.f32 %v2045_v33, %v985_v59 }
 0x363   :  { %v964_v60 = vpop.permute.xlu0 %963 }
 0x364   :  { %1164 = vst [vmem:[#allocation8 + $0x90] sm:$0xff] %v1124_v54  ;;  %1165 = vst.msk [vmem:[#allocation8 + $0x98] sm:$0xff] %vm505_vm1, %v1125_v48  ;;  %v1004_v6 = vmul.f32 %v964_v60, %v2226_v23  ;;  %v1005_v0 = vmul.f32 %v964_v60, %v2227_v56 }
 0x366   :  { %v1144_v32 = vadd.f32 %v1104_v22, %v1004_v6  ;;  %v1145_v61 = vadd.f32 %v1104_v22, %v1005_v0 }
 0x368   :  { %1184 = vst [vmem:[#allocation8 + $0x130] sm:$0xff] %v1144_v32  ;;  %1185 = vst.msk [vmem:[#allocation8 + $0x138] sm:$0xff] %vm505_vm1, %v1145_v61  ;;  %v1099_v33 = vpop.permute.xlu0 %1098 }
 0x369   :  { %v1142_v2 = vadd.f32 %v1099_v33, %v1002_v63  ;;  %v1143_v24 = vadd.f32 %v1099_v33, %v1003_v43 }
 0x36b   :  { %1182 = vst [vmem:[#allocation8 + $0x120] sm:$0xff] %v1142_v2  ;;  %1183 = vst.msk [vmem:[#allocation8 + $0x128] sm:$0xff] %vm505_vm1, %v1143_v24 }
 0x36c   :  { %1415 = shalt.err (!%p1412_p0)
}
 0x36d   :  { %s1416_s16 = scalar_lea.hbm %s2172_s4, 5120 }
 0x36e   :  { %p1417_p1 = scmp.ne.s32.totalorder %s2172_s4, %s1416_s16  ;;  %p1420_p2 = scmp.lt.u32.totalorder %s1416_s16, %s2172_s4 }
 0x370   :  { %p1422_p3 = pnand %p1420_p2, %p1417_p1 }
 0x372   :  { %1425 = shalt.err (!%p1422_p3)
}
 0x373   :  { %1197 = dma.vmem_to_hbm [thread:$0]  %s1192_s1, 5120, %s2172_s4, [#allocation4], %s1434_s27, %s1434_s27, %s1435_s28  }
 0x374   :  { %1430 = dma.done.wait [#allocation4], 5120  }
 0x375   :  { %1431 = vsyncadd [#allocation4], 4294962176 }
 0x376   :  { %1201 = vsyncpa [#allocation3], 1 }
 0x377   :  { %1202 = vsyncpa [#allocation6], 1 }
 0x378   :  { %1203 = vsyncpa [#allocation4], 1 }

</bundles_post_ra>
